<compile_context>
chip_gen: v7x
topology: tpu7x:2x2x1
jax: 0.10.0
libtpu: 0.0.40
codegen_flags: <defaults>
</compile_context>

<pallas_src>
import jax
import jax.numpy as jnp
from jax.experimental import pallas as pl
from jax.experimental.pallas import tpu as pltpu


def _make_kernel(T: int, t_tile: int):
    """Builds the kernel body; T and t_tile (hence the tail-mask need) are static."""
    needs_mask = (T % t_tile) != 0

    def kernel(repr_ref, ones_ref, w1m_ref, w1s_ref, b1_ref, w2_ref, b2_ref,
               out_ref, sum_ref, sumsq_ref):
        t = pl.program_id(1)
        n_t = pl.num_programs(1)

        # --- init accumulators at the first time tile of this batch block ---
        @pl.when(t == 0)
        def _():
            sum_ref[...] = jnp.zeros_like(sum_ref)
            sumsq_ref[...] = jnp.zeros_like(sumsq_ref)

        def accumulate_fast():
            # Full tile: no mask.  Sum over time on the MXU (bf16/f32 in, f32 acc);
            # only square + sumsq-accumulate remain on the VPU.
            r = repr_ref[...]                                     # (tb, tT, D)
            s = jnp.einsum("bqt,btd->bqd", ones_ref[...], r,
                           preferred_element_type=jnp.float32)    # (tb, 8, D)
            sum_ref[...] += s[:, 0, :]
            r32 = r.astype(jnp.float32)
            sumsq_ref[...] += jnp.sum(r32 * r32, axis=1)

        def accumulate_masked():
            # Runs at most once (last, partial tile) -> plain VPU path is fine here.
            r32 = repr_ref[...].astype(jnp.float32)               # (tb, tT, D)
            row = jax.lax.broadcasted_iota(jnp.int32, (t_tile, r32.shape[-1]), 0)
            valid = (t * t_tile + row) < T                        # (tT, D)
            r32 = jnp.where(valid[None, :, :], r32, 0.0)
            sum_ref[...] += jnp.sum(r32, axis=1)
            sumsq_ref[...] += jnp.sum(r32 * r32, axis=1)

        if needs_mask:
            pl.when(t < n_t - 1)(accumulate_fast)
            pl.when(t == n_t - 1)(accumulate_masked)
        else:
            accumulate_fast()

        # --- finalize: stats pooling + Linear(756->512)+ReLU + Linear(512->C) ---
        @pl.when(t == n_t - 1)
        def _():
            mean = sum_ref[...] * jnp.float32(1.0 / T)                           # (tb, D)
            # unbiased (correction=1) variance, one-pass form; clamp vs cancellation
            var = (sumsq_ref[...] - jnp.float32(T) * mean * mean) * jnp.float32(1.0 / (T - 1))
            std = jnp.sqrt(jnp.maximum(var, 0.0))                                # (tb, D)
            # pooled @ W1 == mean @ W1[:D] + std @ W1[D:]
            h = (jnp.dot(mean, w1m_ref[...], preferred_element_type=jnp.float32)
                 + jnp.dot(std, w1s_ref[...], preferred_element_type=jnp.float32)
                 + b1_ref[...])
            h = jnp.maximum(h, 0.0)
            out = jnp.dot(h, w2_ref[...], preferred_element_type=jnp.float32) + b2_ref[...]
            out_ref[...] = out.astype(out_ref.dtype)

    return kernel


def speaker_extractor_forward(repr_, w1, b1, w2, b2, *, t_tile=None, b_tile=None):
    """repr_: (B, T, D) float32/bf16 with 2*D == w1.shape[0].

    w1: (2D, H), b1: (H,), w2: (H, C), b2: (C,) -- Linear weights stored as (in, out).
    """
    B, T, D = repr_.shape
    H = w1.shape[1]
    C = w2.shape[1]
    assert 2 * D == w1.shape[0] and w2.shape[0] == H
    assert T >= 2, "unbiased std (torch.std correction=1) needs T >= 2"

    itemsize = jnp.dtype(repr_.dtype).itemsize

    # ---- batch tile: split into two blocks for B >= 16 so both v7x TCs get work ----
    if b_tile is None:
        tb = min(B, ((pl.cdiv(B, 2) + 7) // 8) * 8) if B >= 16 else B
    elif b_tile >= B:
        tb = B
    else:
        assert b_tile % 8 == 0, "b_tile must be a multiple of 8 when tiling the batch"
        tb = b_tile
    nB = pl.cdiv(B, tb)

    # ---- time tile: ~2 MiB streamed block by default (amortizes per-step overhead,
    #      keeps f32 temporaries small enough for v7x's 64 MiB VMEM) ----
    if t_tile is None:
        t_tile = max(8, (2 * 1024 * 1024) // max(1, tb * D * itemsize))
    tT = min(t_tile, T)
    if tT < T:
        tT = max(8, (tT // 8) * 8)      # sublane-aligned unless it covers the whole axis
        if tT >= T:
            tT = T
    nT = pl.cdiv(T, tT)

    # ---- lane-dense padded head output (sliced off after the call) ----
    Cp = ((C + 127) // 128) * 128
    w2p = jnp.pad(w2, ((0, 0), (0, Cp - C))) if Cp != C else w2
    b2p = jnp.pad(b2, ((0, Cp - C),)) if Cp != C else b2

    w1m = w1[:D, :]                 # (D, H) mean half
    w1s = w1[D:, :]                 # (D, H) std half
    b1_2d = b1.reshape(1, H)
    b2_2d = b2p.reshape(1, Cp)

    # ones operand for the MXU time-sum (row 0 of the q axis is used).
    ones = jnp.ones((tb, 8, tT), repr_.dtype)

    # ---- explicit VMEM budget (double-buffered activations + resident weights + temps) ----
    weight_bytes = (2 * D * H + H + H * Cp + Cp) * 4
    in_tile_bytes = tb * tT * D * itemsize
    vmem_est = (2 * in_tile_bytes + 2 * tb * 8 * tT * itemsize + 2 * weight_bytes
                + 2 * tb * Cp * 4 + 2 * tb * D * 4 + 3 * tb * tT * D * 4)
    vmem_limit = int(min(max(32 * 1024 * 1024, vmem_est * 5 // 4), 64 * 1024 * 1024))

    cost = pl.CostEstimate(
        flops=int(2 * B * T * D * 9 + 2 * B * (2 * D * H + H * Cp)),
        transcendentals=int(B * D),
        bytes_accessed=int(B * T * D * itemsize + weight_bytes + B * Cp * 4),
    )

    grid_spec = pltpu.PrefetchScalarGridSpec(
        num_scalar_prefetch=0,
        grid=(nB, nT),
        in_specs=[
            pl.BlockSpec((tb, tT, D), lambda b, t: (b, t, 0)),   # streamed activations
            pl.BlockSpec((tb, 8, tT), lambda b, t: (0, 0, 0)),   # ones for MXU time-sum
            pl.BlockSpec((D, H), lambda b, t: (0, 0)),           # weights stay VMEM-resident
            pl.BlockSpec((D, H), lambda b, t: (0, 0)),
            pl.BlockSpec((1, H), lambda b, t: (0, 0)),
            pl.BlockSpec((H, Cp), lambda b, t: (0, 0)),
            pl.BlockSpec((1, Cp), lambda b, t: (0, 0)),
        ],
        out_specs=pl.BlockSpec((tb, Cp), lambda b, t: (b, 0)),
        scratch_shapes=[
            pltpu.VMEM((tb, D), jnp.float32),   # running sum over time
            pltpu.VMEM((tb, D), jnp.float32),   # running sum of squares over time
        ],
    )

    out_padded = pl.pallas_call(
        _make_kernel(T, tT),
        out_shape=jax.ShapeDtypeStruct((B, Cp), jnp.float32),
        grid_spec=grid_spec,
        compiler_params=pltpu.CompilerParams(
            dimension_semantics=("parallel", "arbitrary"),
            vmem_limit_bytes=vmem_limit),
        cost_estimate=cost,
    )(repr_, ones, w1m, w1s, b1_2d, w2p, b2_2d)

    return out_padded[:, :C]


def _reference(repr_, w1, b1, w2, b2):
    r = repr_.astype(jnp.float32)
    mean = jnp.mean(r, axis=1)
    std = jnp.std(r, axis=1, ddof=1)
    pooled = jnp.concatenate([mean, std], axis=1)
    h = jnp.maximum(pooled @ w1 + b1, 0.0)
    return h @ w2 + b2


if __name__ == "__main__":
    key = jax.random.PRNGKey(0)
    B, T, D = 2, 37, 378          # 2*D = 756 matches Linear(756, 512)
    HID, N_CLASS = 512, 10

    k_repr, k_w1, k_b1, k_w2, k_b2 = jax.random.split(key, 5)
    # Feature-extractor output streamed to the kernel in bf16 (halves HBM traffic);
    # the kernel accumulates in f32.
    repr_bf16 = jax.random.normal(k_repr, (B, T, D), jnp.float32).astype(jnp.bfloat16)

    # Deterministic PyTorch-Linear-style init (uniform +- 1/sqrt(fan_in)); stored as (in, out).
    lim1 = 1.0 / (2 * D) ** 0.5
    w1 = jax.random.uniform(k_w1, (2 * D, HID), jnp.float32, -lim1, lim1)
    b1 = jax.random.uniform(k_b1, (HID,), jnp.float32, -lim1, lim1)
    lim2 = 1.0 / HID ** 0.5
    w2 = jax.random.uniform(k_w2, (HID, N_CLASS), jnp.float32, -lim2, lim2)
    b2 = jax.random.uniform(k_b2, (N_CLASS,), jnp.float32, -lim2, lim2)

    ref = _reference(repr_bf16, w1, b1, w2, b2)

    # 1) default tiling: whole time axis in one block (mask-free fast path only)
    out_full = speaker_extractor_forward(repr_bf16, w1, b1, w2, b2)
    out_full = jax.block_until_ready(out_full)
    assert out_full.shape == (B, N_CLASS)
    assert jnp.allclose(out_full, ref, atol=2e-3, rtol=2e-3), "mismatch (default tiling)"

    # 2) forced small time tile: exercises streaming + partial-tile masked branch
    out_tiled = speaker_extractor_forward(repr_bf16, w1, b1, w2, b2, t_tile=16)
    out_tiled = jax.block_until_ready(out_tiled)
    assert out_tiled.shape == (B, N_CLASS)
    assert jnp.allclose(out_tiled, ref, atol=2e-3, rtol=2e-3), "mismatch (streamed tiling)"

    print("KERNEL_OK")
</pallas_src>

<mosaic_0001>
module attributes {stable_mosaic.version = 11 : i64} {
  func.func @kernel(%arg0: i32, %arg1: i32, %arg2: memref<2x37x378xbf16, #tpu.memory_space<vmem>>, %arg3: memref<2x8x37xbf16, #tpu.memory_space<vmem>>, %arg4: memref<378x512xf32, #tpu.memory_space<vmem>>, %arg5: memref<378x512xf32, #tpu.memory_space<vmem>>, %arg6: memref<1x512xf32, #tpu.memory_space<vmem>>, %arg7: memref<512x128xf32, #tpu.memory_space<vmem>>, %arg8: memref<1x128xf32, #tpu.memory_space<vmem>>, %arg9: memref<2x128xf32, #tpu.memory_space<vmem>>, %arg10: memref<2x378xf32, #tpu.memory_space<vmem>>, %arg11: memref<2x378xf32, #tpu.memory_space<vmem>>) attributes {dimension_semantics = [#tpu.dimension_semantics<parallel>, #tpu.dimension_semantics<arbitrary>], iteration_bounds = array<i64: 1, 1>, scalar_prefetch = 0 : i64, scratch_operands = 2 : i64, tpu.core_type = #tpu.core_type<tc>, window_params = [{transform_indices = @transform_0, window_bounds = array<i64: 2, 37, 378>}, {pipeline_mode = #tpu.pipeline_mode<synchronous>, transform_indices = @transform_1, window_bounds = array<i64: 2, 8, 37>}, {pipeline_mode = #tpu.pipeline_mode<synchronous>, transform_indices = @transform_2, window_bounds = array<i64: 378, 512>}, {pipeline_mode = #tpu.pipeline_mode<synchronous>, transform_indices = @transform_3, window_bounds = array<i64: 378, 512>}, {pipeline_mode = #tpu.pipeline_mode<synchronous>, transform_indices = @transform_4, window_bounds = array<i64: 1, 512>}, {pipeline_mode = #tpu.pipeline_mode<synchronous>, transform_indices = @transform_5, window_bounds = array<i64: 512, 128>}, {pipeline_mode = #tpu.pipeline_mode<synchronous>, transform_indices = @transform_6, window_bounds = array<i64: 1, 128>}, {transform_indices = @transform_7, window_bounds = array<i64: 2, 128>}]} {
    %c0_i32 = arith.constant 0 : i32
    %0 = arith.cmpi eq, %arg1, %c0_i32 : i32
    %1 = arith.extui %0 : i1 to i32
    %c0_i32_0 = arith.constant 0 : i32
    %2 = arith.cmpi ne, %1, %c0_i32_0 : i32
    scf.if %2 {
      %cst_17 = arith.constant 0.000000e+00 : f32
      %20 = vector.broadcast %cst_17 : f32 to vector<2x378xf32>
      %c0_18 = arith.constant 0 : index
      %c0_19 = arith.constant 0 : index
      %21 = vector.load %arg10[%c0_18, %c0_19] : memref<2x378xf32, #tpu.memory_space<vmem>>, vector<2x378xf32>
      tpu.vector_store %arg10[%c0_18, %c0_19], %20 {strides = array<i32>} : memref<2x378xf32, #tpu.memory_space<vmem>>, vector<2x378xf32>,
      %cst_20 = arith.constant 0.000000e+00 : f32
      %22 = vector.broadcast %cst_20 : f32 to vector<2x378xf32>
      %c0_21 = arith.constant 0 : index
      %c0_22 = arith.constant 0 : index
      %23 = vector.load %arg11[%c0_21, %c0_22] : memref<2x378xf32, #tpu.memory_space<vmem>>, vector<2x378xf32>
      tpu.vector_store %arg11[%c0_21, %c0_22], %22 {strides = array<i32>} : memref<2x378xf32, #tpu.memory_space<vmem>>, vector<2x378xf32>,
    } else {
    }
    %c0 = arith.constant 0 : index
    %c0_1 = arith.constant 0 : index
    %c0_2 = arith.constant 0 : index
    %3 = vector.load %arg2[%c0, %c0_1, %c0_2] : memref<2x37x378xbf16, #tpu.memory_space<vmem>>, vector<2x37x378xbf16>
    %c0_3 = arith.constant 0 : index
    %c0_4 = arith.constant 0 : index
    %c0_5 = arith.constant 0 : index
    %4 = vector.load %arg3[%c0_3, %c0_4, %c0_5] : memref<2x8x37xbf16, #tpu.memory_space<vmem>>, vector<2x8x37xbf16>
    "tpu.trace_start"() <{level = 10 : i32, message = "bqt,btd->bqd"}> : () -> ()
    %cst = arith.constant dense<0.000000e+00> : vector<2x8x378xf32>
    %5 = tpu.matmul %4, %3, %cst {dimension_numbers = #tpu.dot_dimension_numbers<[2], [1], [1], [2], [0, 0, 0, 1, 1, 2], [0], [0]>} : vector<2x8x37xbf16>, vector<2x37x378xbf16>, vector<2x8x378xf32> -> vector<2x8x378xf32>
    "tpu.trace_stop"() : () -> ()
    %c0_6 = arith.constant 0 : index
    %c0_7 = arith.constant 0 : index
    %6 = vector.load %arg10[%c0_6, %c0_7] : memref<2x378xf32, #tpu.memory_space<vmem>>, vector<2x378xf32>
    %7 = vector.extract_strided_slice %5 {offsets = [0, 0, 0], sizes = [2, 1, 378], strides = [1, 1, 1]} : vector<2x8x378xf32> to vector<2x1x378xf32>
    %8 = vector.shape_cast %7 : vector<2x1x378xf32> to vector<2x378xf32>
    %9 = arith.addf %6, %8 : vector<2x378xf32>
    %c0_8 = arith.constant 0 : index
    %c0_9 = arith.constant 0 : index
    %10 = vector.load %arg10[%c0_8, %c0_9] : memref<2x378xf32, #tpu.memory_space<vmem>>, vector<2x378xf32>
    tpu.vector_store %arg10[%c0_8, %c0_9], %9 {strides = array<i32>} : memref<2x378xf32, #tpu.memory_space<vmem>>, vector<2x378xf32>,
    %11 = arith.extf %3 : vector<2x37x378xbf16> to vector<2x37x378xf32>
    %c0_10 = arith.constant 0 : index
    %c0_11 = arith.constant 0 : index
    %12 = vector.load %arg11[%c0_10, %c0_11] : memref<2x378xf32, #tpu.memory_space<vmem>>, vector<2x378xf32>
    %13 = arith.mulf %11, %11 : vector<2x37x378xf32>
    %cst_12 = arith.constant dense<0.000000e+00> : vector<2x378xf32>
    %14 = vector.multi_reduction <add>, %13, %cst_12 [1] : vector<2x37x378xf32> to vector<2x378xf32>
    %15 = arith.addf %12, %14 : vector<2x378xf32>
    %c0_13 = arith.constant 0 : index
    %c0_14 = arith.constant 0 : index
    %16 = vector.load %arg11[%c0_13, %c0_14] : memref<2x378xf32, #tpu.memory_space<vmem>>, vector<2x378xf32>
    tpu.vector_store %arg11[%c0_13, %c0_14], %15 {strides = array<i32>} : memref<2x378xf32, #tpu.memory_space<vmem>>, vector<2x378xf32>,
    %c0_i32_15 = arith.constant 0 : i32
    %17 = arith.cmpi eq, %arg1, %c0_i32_15 : i32
    %18 = arith.extui %17 : i1 to i32
    %c0_i32_16 = arith.constant 0 : i32
    %19 = arith.cmpi ne, %18, %c0_i32_16 : i32
    scf.if %19 {
      %c0_17 = arith.constant 0 : index
      %c0_18 = arith.constant 0 : index
      %20 = vector.load %arg10[%c0_17, %c0_18] : memref<2x378xf32, #tpu.memory_space<vmem>>, vector<2x378xf32>
      %cst_19 = arith.constant 0.0270270277 : f32
      %21 = vector.broadcast %cst_19 : f32 to vector<2x378xf32>
      %22 = arith.mulf %20, %21 : vector<2x378xf32>
      %c0_20 = arith.constant 0 : index
      %c0_21 = arith.constant 0 : index
      %23 = vector.load %arg11[%c0_20, %c0_21] : memref<2x378xf32, #tpu.memory_space<vmem>>, vector<2x378xf32>
      %cst_22 = arith.constant 3.700000e+01 : f32
      %24 = vector.broadcast %cst_22 : f32 to vector<2x378xf32>
      %25 = arith.mulf %24, %22 : vector<2x378xf32>
      %26 = arith.mulf %25, %22 : vector<2x378xf32>
      %27 = arith.subf %23, %26 : vector<2x378xf32>
      %cst_23 = arith.constant 0.027777778 : f32
      %28 = vector.broadcast %cst_23 : f32 to vector<2x378xf32>
      %29 = arith.mulf %27, %28 : vector<2x378xf32>
      %cst_24 = arith.constant 0.000000e+00 : f32
      %30 = vector.broadcast %cst_24 : f32 to vector<2x378xf32>
      %31 = arith.maximumf %29, %30 : vector<2x378xf32>
      %32 = math.sqrt %31 : vector<2x378xf32>
      %c0_25 = arith.constant 0 : index
      %c0_26 = arith.constant 0 : index
      %33 = vector.load %arg4[%c0_25, %c0_26] : memref<378x512xf32, #tpu.memory_space<vmem>>, vector<378x512xf32>
      %cst_27 = arith.constant dense<0.000000e+00> : vector<2x512xf32>
      %34 = tpu.matmul %22, %33, %cst_27 {dimension_numbers = #tpu.dot_dimension_numbers<[1], [0], [0], [1], [0, 0, 1, 1], [], []>} : vector<2x378xf32>, vector<378x512xf32>, vector<2x512xf32> -> vector<2x512xf32>
      %c0_28 = arith.constant 0 : index
      %c0_29 = arith.constant 0 : index
      %35 = vector.load %arg5[%c0_28, %c0_29] : memref<378x512xf32, #tpu.memory_space<vmem>>, vector<378x512xf32>
      %cst_30 = arith.constant dense<0.000000e+00> : vector<2x512xf32>
      %36 = tpu.matmul %32, %35, %cst_30 {dimension_numbers = #tpu.dot_dimension_numbers<[1], [0], [0], [1], [0, 0, 1, 1], [], []>} : vector<2x378xf32>, vector<378x512xf32>, vector<2x512xf32> -> vector<2x512xf32>
      %37 = arith.addf %34, %36 : vector<2x512xf32>
      %c0_31 = arith.constant 0 : index
      %c0_32 = arith.constant 0 : index
      %38 = vector.load %arg6[%c0_31, %c0_32] : memref<1x512xf32, #tpu.memory_space<vmem>>, vector<1x512xf32>
      %39 = vector.broadcast %38 : vector<1x512xf32> to vector<2x512xf32>
      %40 = arith.addf %37, %39 : vector<2x512xf32>
      %cst_33 = arith.constant 0.000000e+00 : f32
      %41 = vector.broadcast %cst_33 : f32 to vector<2x512xf32>
      %42 = arith.maximumf %40, %41 : vector<2x512xf32>
      %c0_34 = arith.constant 0 : index
      %c0_35 = arith.constant 0 : index
      %43 = vector.load %arg7[%c0_34, %c0_35] : memref<512x128xf32, #tpu.memory_space<vmem>>, vector<512x128xf32>
      %cst_36 = arith.constant dense<0.000000e+00> : vector<2x128xf32>
      %44 = tpu.matmul %42, %43, %cst_36 {dimension_numbers = #tpu.dot_dimension_numbers<[1], [0], [0], [1], [0, 0, 1, 1], [], []>} : vector<2x512xf32>, vector<512x128xf32>, vector<2x128xf32> -> vector<2x128xf32>
      %c0_37 = arith.constant 0 : index
      %c0_38 = arith.constant 0 : index
      %45 = vector.load %arg8[%c0_37, %c0_38] : memref<1x128xf32, #tpu.memory_space<vmem>>, vector<1x128xf32>
      %46 = vector.broadcast %45 : vector<1x128xf32> to vector<2x128xf32>
      %47 = arith.addf %44, %46 : vector<2x128xf32>
      %c0_39 = arith.constant 0 : index
      %c0_40 = arith.constant 0 : index
      %48 = vector.load %arg9[%c0_39, %c0_40] : memref<2x128xf32, #tpu.memory_space<vmem>>, vector<2x128xf32>
      tpu.vector_store %arg9[%c0_39, %c0_40], %47 {strides = array<i32>} : memref<2x128xf32, #tpu.memory_space<vmem>>, vector<2x128xf32>,
    } else {
    }
    return
  }
  func.func @transform_0(%arg0: i32, %arg1: i32) -> (i32, i32, i32) {
    %c0_i32 = arith.constant 0 : i32
    %c0_i32_0 = arith.constant 0 : i32
    return %arg0, %arg1, %c0_i32 : i32, i32, i32
  }
  func.func @transform_1(%arg0: i32, %arg1: i32) -> (i32, i32, i32) {
    %c0_i32 = arith.constant 0 : i32
    %c0_i32_0 = arith.constant 0 : i32
    %c0_i32_1 = arith.constant 0 : i32
    %c0_i32_2 = arith.constant 0 : i32
    return %c0_i32, %c0_i32_0, %c0_i32_1 : i32, i32, i32
  }
  func.func @transform_2(%arg0: i32, %arg1: i32) -> (i32, i32) {
    %c0_i32 = arith.constant 0 : i32
    %c0_i32_0 = arith.constant 0 : i32
    %c0_i32_1 = arith.constant 0 : i32
    return %c0_i32, %c0_i32_0 : i32, i32
  }
  func.func @transform_3(%arg0: i32, %arg1: i32) -> (i32, i32) {
    %c0_i32 = arith.constant 0 : i32
    %c0_i32_0 = arith.constant 0 : i32
    %c0_i32_1 = arith.constant 0 : i32
    return %c0_i32, %c0_i32_0 : i32, i32
  }
  func.func @transform_4(%arg0: i32, %arg1: i32) -> (i32, i32) {
    %c0_i32 = arith.constant 0 : i32
    %c0_i32_0 = arith.constant 0 : i32
    %c0_i32_1 = arith.constant 0 : i32
    return %c0_i32, %c0_i32_0 : i32, i32
  }
  func.func @transform_5(%arg0: i32, %arg1: i32) -> (i32, i32) {
    %c0_i32 = arith.constant 0 : i32
    %c0_i32_0 = arith.constant 0 : i32
    %c0_i32_1 = arith.constant 0 : i32
    return %c0_i32, %c0_i32_0 : i32, i32
  }
  func.func @transform_6(%arg0: i32, %arg1: i32) -> (i32, i32) {
    %c0_i32 = arith.constant 0 : i32
    %c0_i32_0 = arith.constant 0 : i32
    %c0_i32_1 = arith.constant 0 : i32
    return %c0_i32, %c0_i32_0 : i32, i32
  }
  func.func @transform_7(%arg0: i32, %arg1: i32) -> (i32, i32) {
    %c0_i32 = arith.constant 0 : i32
    %c0_i32_0 = arith.constant 0 : i32
    return %arg0, %c0_i32 : i32, i32
  }
}

</mosaic_0001>

<bundles_post_ra>
// kernel: tpu_custom_call.1
= control target key start
LH: loop header
LB: loop body
LE: loop exit
PB: predicated region body
PF: predicated region fallthrough
CT: control target
= control target key end

     0   :  { %12 = vsyncpa [#allocation5], 0  ;;  %s3006_s0 = inlined_call_operand.vmem [shape: bf16[2,37,378], index: 0, kind: input, shape index: {}]   ;;  %s3007_s1 = inlined_call_operand.vmem [shape: bf16[2,8,37], index: 1, kind: input, shape index: {}]   ;;  %s3008_s2 = inlined_call_operand.hbm [shape: f32[378,512], index: 2, kind: input, shape index: {}]   ;;  %s3009_s3 = inlined_call_operand.hbm [shape: f32[378,512], index: 3, kind: input, shape index: {}]   ;;  %s3010_s4 = inlined_call_operand.vmem [shape: f32[1,512], index: 4, kind: input, shape index: {}]   ;;  %s3011_s5 = inlined_call_operand.hbm [shape: f32[512,128], index: 5, kind: input, shape index: {}]   ;;  %s3012_s6 = inlined_call_operand.vmem [shape: f32[1,128], index: 6, kind: input, shape index: {}]   ;;  %s3013_s7 = inlined_call_operand.hbm [shape: f32[2,128], index: 7, kind: output, shape index: {}]  }
   0x1   :  { %13 = vsyncpa [#allocation8], 0 }
   0x2   :  { %14 = vsyncpa [#allocation6], 0  ;;  %s2681_s24 = smov [#allocation7]   ;;  %s2682_s26 = smov [#allocation4]  }
   0x3   :  { %s36_s25 = sshll.u32 %s2681_s24, 4  ;;  %s24_s27 = sshll.u32 %s2682_s26, 4  ;;  %s37_s25 = int_to_ptr.vmem [resolvable:$true] %s36_s25  ;;  %s2736_s27 = int_to_ptr.vmem [resolvable:$true] %s24_s27 }
   0x4   :  { %s2547_s30 = scalar_lea.hbm %s3009_s3, 24576 }
   0x5   :  { %p2548_p0 = scmp.ne.s32.totalorder %s3009_s3, %s2547_s30  ;;  %p2551_p1 = scmp.lt.u32.totalorder %s2547_s30, %s3009_s3 }
   0x7   :  { %p2553_p2 = pnand %p2551_p1, %p2548_p0 }
   0x9   :  { %2556 = shalt.err (!%p2553_p2)
}
   0xa   :  { %s2557_s12 = scalar_lea.vmem %s37_s25, 24576  ;;  %p2562_p4 = scmp.lt.s32.totalorder %s37_s25, %s37_s25 }
   0xb   :  { %p2558_p3 = scmp.ne.s32.totalorder %s37_s25, %s2557_s12  ;;  %p2563_p5 = scmp.lt.s32.totalorder %s2557_s12, %s2557_s12 }
   0xd   :  { %p2564_p6 = por %p2563_p5, %p2562_p4 }
   0xf   :  { %p2565_p7 = pnand %p2564_p6, %p2558_p3 }
  0x11   :  { %2568 = shalt.err (!%p2565_p7)
}
  0x12   :  { %s2683_s13 = smov 512   ;;  %s2684_s14 = smov 32  }
  0x13   :  { %42 = dma.hbm_to_vmem [thread:$0]  %s3009_s3, 24576, %s37_s25, [#allocation8], %s2683_s13, %s2683_s13, %s2684_s14  }
  0x14   :  { %s2569_s19 = scalar_lea.hbm %s3008_s2, 24576 }
  0x15   :  { %p2570_p8 = scmp.ne.s32.totalorder %s3008_s2, %s2569_s19  ;;  %p2573_p9 = scmp.lt.u32.totalorder %s2569_s19, %s3008_s2 }
  0x17   :  { %p2575_p10 = pnand %p2573_p9, %p2570_p8 }
  0x19   :  { %2578 = shalt.err (!%p2575_p10)
}
  0x1a   :  { %s2579_s24 = scalar_lea.vmem %s2736_s27, 24576  ;;  %p2584_p12 = scmp.lt.s32.totalorder %s2736_s27, %s2736_s27 }
  0x1b   :  { %p2580_p11 = scmp.ne.s32.totalorder %s2736_s27, %s2579_s24  ;;  %p2585_p13 = scmp.lt.s32.totalorder %s2579_s24, %s2579_s24 }
  0x1d   :  { %p2586_p0 = por %p2585_p13, %p2584_p12 }
  0x1f   :  { %p2587_p1 = pnand %p2586_p0, %p2580_p11 }
  0x21   :  { %2590 = shalt.err (!%p2587_p1)
}
  0x22   :  { %30 = dma.hbm_to_vmem [thread:$0]  %s3008_s2, 24576, %s2736_s27, [#allocation5], %s2683_s13, %s2683_s13, %s2684_s14  }
  0x23   :  { %s2685_s26 = smov [#allocation9]   ;;  %s2591_s8 = scalar_lea.hbm %s3011_s5, 8192 }
  0x24   :  { %s50_s28 = sshll.u32 %s2685_s26, 4  ;;  %p2592_p2 = scmp.ne.s32.totalorder %s3011_s5, %s2591_s8  ;;  %s51_s28 = int_to_ptr.vmem [resolvable:$true] %s50_s28 }
  0x25   :  { %p2595_p3 = scmp.lt.u32.totalorder %s2591_s8, %s3011_s5 }
  0x27   :  { %p2597_p4 = pnand %p2595_p3, %p2592_p2 }
  0x29   :  { %2600 = shalt.err (!%p2597_p4)
}
  0x2a   :  { %s2601_s15 = scalar_lea.vmem %s51_s28, 8192  ;;  %p2606_p6 = scmp.lt.s32.totalorder %s51_s28, %s51_s28 }
  0x2b   :  { %p2602_p5 = scmp.ne.s32.totalorder %s51_s28, %s2601_s15  ;;  %p2607_p7 = scmp.lt.s32.totalorder %s2601_s15, %s2601_s15 }
  0x2d   :  { %p2608_p8 = por %p2607_p7, %p2606_p6 }
  0x2f   :  { %p2609_p9 = pnand %p2608_p8, %p2602_p5 }
  0x31   :  { %2612 = shalt.err (!%p2609_p9)
}
  0x32   :  { %s2686_s2 = smov 128   ;;  %s2687_s27 = smov 8  }
  0x33   :  { %56 = dma.hbm_to_vmem [thread:$0]  %s3011_s5, 8192, %s51_s28, [#allocation8], %s2686_s2, %s2686_s2, %s2687_s27  }
  0x34   :  { %2635 = dma.done.wait [#allocation5], 24576  }
  0x35   :  { %2636 = vsyncadd [#allocation5], 4294942720 }
  0x36   :  { %2637 = dma.done.wait [#allocation8], 32768  }
  0x37   :  { %2638 = vsyncadd [#allocation8], 4294934528  ;;  %vm73_vm0 = vcmask 1041408   ;;  %vm74_vm1 = vcmask 1043458   ;;  %v2688_v0 = vmov 0.0   ;;  %vm76_vm3 = vcmask 996356  }
  0x38   :  { %2025 = vmatprep.subr.bf16.mxu1 %v2688_v0  ;;  %vm75_vm2 = vmor %vm74_vm1, %vm73_vm0  ;;  %v384_v2 = vlaneseq  ;;  %v2689_v3 = vmov 1983009808   ;;  %vm147_vm5 = vcmask 1042432   ;;  %v2690_v5 = vmov 65535   ;;  %v80_v10 = vld [vmem:[%s3006_s0] sm:$0xff]  ;;  %v82_v11 = vld [vmem:[%s3006_s0 + $0xc] sm:$0xff] }
  0x39   :  { %vm2781_vm4 = vmor %vm76_vm3, %vm75_vm2  ;;  %v382_v4 = vunpack.c.l.s4 %v2689_v3  ;;  %v148_v6 = vsel %vm73_vm0, 4294967295, %v2690_v5  ;;  %v2691_v8 = vmov 0   ;;  %vm2692_vm6 = vmmov 0   ;;  %v81_v12 = vld [vmem:[%s3006_s0 + $0x8] sm:$0xf]  ;;  %v84_v17 = vld [vmem:[%s3006_s0 + $0x18] sm:$0xff] }
  0x3a   :  { %78 = vst.msk [vmem:[#allocation2] sm:$0x3f] %vm2781_vm4, %v2688_v0  ;;  %79 = vst.msk [vmem:[#allocation3] sm:$0x3f] %vm2781_vm4, %v2688_v0  ;;  %v2792_v7 = vshrl.u32 %v384_v2, 7  ;;  %191 = vmatprep.mubr.bf16.mxu0 %v2691_v8  ;;  %2031 = vmatprep.mubr.msk.bf16.mxu1 %vm2692_vm6, %v2688_v0  ;;  %vm516_vm7 = vcmask 998400   ;;  %v1913_v15 = vcombine.high %v80_v10, %v82_v11  ;;  %v1912_v19 = vcombine.low %v80_v10, %v82_v11 }
  0x3b   :  { %v383_v9 = vunpack.c.0.s8 %v382_v4  ;;  %v2806_v13 = vsel %vm147_vm5, %v148_v6, 0  ;;  %v83_v16 = vld [vmem:[%s3006_s0 + $0x14] sm:$0xf]  ;;  %v86_v18 = vld [vmem:[%s3006_s0 + $0x24] sm:$0xff]  ;;  %v434_v21 = vunpack.c.l.bf16 %v81_v12  ;;  %2661 = vmul.bf16.f32.vacc1 %v80_v10, %v80_v10  ;;  %v85_v26 = vld [vmem:[%s3006_s0 + $0x20] sm:$0xf] }
  0x3c   :  { %v1914_v20 = vcombine.low %v81_v12, %v83_v16  ;;  %159 = vmatprep.subr.bf16.mxu0 %v1913_v15  ;;  %v437_v22 = vunpack.c.l.bf16 %v83_v16  ;;  %v1916_v24 = vcombine.high %v84_v17, %v86_v18  ;;  %2662 = vmac.bf16.f32.vacc1 %v82_v11, %v82_v11  ;;  %v87_v27 = vld [vmem:[%s3006_s0 + $0x2c] sm:$0xf]  ;;  %v88_v29 = vld [vmem:[%s3006_s0 + $0x30] sm:$0x77]  ;;  %v89_v37 = vld [vmem:[%s3006_s0 + $0x38] sm:$0x7] }
  0x3d   :  { %v2809_v14 = vsub.s32 %v383_v9, %v2792_v7  ;;  %160 = vmatpush1.bf16.msra.mxu0 %v1912_v19  ;;  %v465_v23 = vmul.f32 %v434_v21, %v434_v21  ;;  %vm496_vm8 = vcmask 1044480   ;;  %vm142_vm9 = vcmask 302080   ;;  %v90_v51 = vld [vmem:[%s3006_s0 + $0x3c] sm:$0xff]  ;;  %v92_v52 = vld [vmem:[%s3006_s0 + $0x48] sm:$0xff]  ;;  %v91_v15 = vld [vmem:[%s3006_s0 + $0x44] sm:$0xf] }
  0x3e   :  { %2026 = vmatpush3.bf16.msra.mxu1 %v1914_v20  ;;  %v468_v25 = vmul.f32 %v437_v22, %v437_v22  ;;  %161 = vmatprep.subr.bf16.mxu0 %v1916_v24  ;;  %v1915_v31 = vcombine.low %v84_v17, %v86_v18  ;;  %2663 = vmac.bf16.f32.vacc1 %v84_v17, %v84_v17  ;;  %vm524_vm10 = vcmask 995328   ;;  %v100_v6 = vld [vmem:[%s3007_s1] sm:$0xf]  ;;  %v93_v16 = vld [vmem:[%s3006_s0 + $0x50] sm:$0xf]  ;;  %v94_v21 = vld [vmem:[%s3006_s0 + $0x54] sm:$0xff] }
  0x3f   :  { %2027 = vmatprep.subr.bf16.mxu1 %v2688_v0  ;;  %v517_v28 = vsel %vm516_vm7, %v465_v23, 0.0  ;;  %v1917_v33 = vcombine.low %v85_v26, %v87_v27  ;;  %v440_v34 = vunpack.c.l.bf16 %v85_v26  ;;  %v443_v35 = vunpack.c.l.bf16 %v87_v27  ;;  %v96_v22 = vld [vmem:[%s3006_s0 + $0x60] sm:$0xff]  ;;  %v956_v1 = vld [vmem:[#allocation7 + $0x400] sm:$0xff]  ;;  %s2695_s11 = smov [#allocation10]  }
  0x40   :  { %v518_v30 = vsel %vm516_vm7, %v468_v25, 0.0  ;;  %v1919_v36 = vcombine.high %v88_v29, %v88_v29  ;;  %2664 = vmac.bf16.f32.vacc1 %v86_v18, %v86_v18  ;;  %v2693_v42 = vmov 1935823168   ;;  %s1902_s12 = sshll.u32 %s2695_s11, 4  ;;  %s1903_s12 = int_to_ptr.vmem [resolvable:$true] %s1902_s12 }
  0x41   :  { %v519_v32 = vadd.f32 %v518_v30, %v517_v28  ;;  %162 = vmatpush1.bf16.msra.mxu0 %v1915_v31  ;;  %v2669_v43 = vunpack.c.l.s4 %v2693_v42  ;;  %v444_v48 = vunpack.c.l.bf16 %v88_v29  ;;  %v445_v49 = vunpack.c.h.bf16 %v88_v29  ;;  %s2613_s15 = scalar_lea.vmem %s1903_s12, 32  ;;  %p2618_p11 = scmp.lt.s32.totalorder %s1903_s12, %s1903_s12 }
  0x42   :  { %v2665_v38 = vmovacc.add.low.vacc1  ;;  %2028 = vmatpush3.bf16.msra.mxu1 %v1917_v33  ;;  %v1918_v50 = vcombine.low %v88_v29, %v88_v29  ;;  %v471_v53 = vmul.f32 %v440_v34, %v440_v34  ;;  %v474_v54 = vmul.f32 %v443_v35, %v443_v35  ;;  %p2614_p10 = scmp.ne.s32.totalorder %s1903_s12, %s2613_s15  ;;  %p2619_p12 = scmp.lt.s32.totalorder %s2613_s15, %s2613_s15 }
  0x43   :  { %v2666_v39 = vmovacc.add.high.vacc1  ;;  %v2670_v44 = vunpack.c.0.s8 %v2669_v43  ;;  %v154_v55 = vand.u32 %v1919_v36, %v2806_v13  ;;  %2029 = vmatprep.subr.bf16.mxu1 %v2688_v0  ;;  %v475_v56 = vmul.f32 %v444_v48, %v444_v48  ;;  %v97_v43 = vld [vmem:[%s3006_s0 + $0x68] sm:$0xf] }
  0x44   :  { %v476_v57 = vmul.f32 %v445_v49, %v445_v49  ;;  %v151_v58 = vand.u32 %v1918_v50, %v2806_v13  ;;  %v1920_v59 = vcombine.low %v89_v37, %v89_v37  ;;  %v520_v60 = vsel %vm516_vm7, %v471_v53, 0.0  ;;  %v98_v49 = vld [vmem:[%s3006_s0 + $0x6c] sm:$0x77]  ;;  %p2620_p13 = por %p2619_p12, %p2618_p11 }
  0x45   :  { %v2667_v40 = vcombine.low %v2665_v38, %v2666_v39  ;;  %v2668_v41 = vcombine.high %v2665_v38, %v2666_v39  ;;  %v2836_v45 = vsub.s32 %v2670_v44, %v2792_v7  ;;  %v522_v61 = vsel %vm516_vm7, %v474_v54, 0.0  ;;  %163 = vmatprep.subr.bf16.mxu0 %v154_v55  ;;  %v95_v39 = vld [vmem:[%s3006_s0 + $0x5c] sm:$0xf] }
  0x46   :  { %v446_v62 = vunpack.c.l.bf16 %v89_v37  ;;  %v1924_v63 = vcombine.high %v90_v51, %v92_v52  ;;  %v521_v2 = vadd.f32 %v520_v60, %v519_v32  ;;  %v497_v3 = vsel %vm496_vm8, %v475_v56, 0.0  ;;  %164 = vmatpush1.bf16.msra.mxu0 %v151_v58  ;;  %p2621_p0 = pnand %p2620_p13, %p2614_p10 }
  0x47   :  { %v2674_v46 = vrot.slane %v2667_v40, %v2836_v45  ;;  %v2680_v47 = vrot.slane %v2668_v41, %v2836_v45  ;;  %v508_v4 = vsel %vm496_vm8, %v476_v57, 0.0  ;;  %v157_v5 = vand.u32 %v1920_v59, %v2806_v13 }
  0x48   :  { %v477_v11 = vmul.f32 %v446_v62, %v446_v62  ;;  %292 = vmatprep.subr.bf16.mxu0 %v1924_v63  ;;  %v523_v12 = vadd.f32 %v522_v61, %v521_v2  ;;  %v1923_v25 = vcombine.low %v90_v51, %v92_v52  ;;  %v1925_v26 = vcombine.low %v91_v15, %v93_v16 }
  0x49   :  { %v498_v9 = vadd.f32 %v2674_v46, %v497_v3  ;;  %v509_v10 = vadd.f32 %v2680_v47, %v508_v4  ;;  %2030 = vmatpush3.bf16.msra.mxu1 %v157_v5  ;;  %1921 = vmatmul.mubr.msk.bf16.vlgmr.msra.gmra.mrb[0].mxu0 %vm142_vm9, %v100_v6  ;;  %2641 = vmul.bf16.f32.vacc0 %v90_v51, %v90_v51  ;;  %v449_v28 = vunpack.c.l.bf16 %v91_v15 }
  0x4a   :  { %v525_v19 = vsel %vm524_vm10, %v477_v11, 0.0  ;;  %2035 = vmatprep.subr.bf16.mxu1 %v2688_v0  ;;  %324 = vmatprep.mubr.bf16.mxu0 %v2691_v8  ;;  %2642 = vmac.bf16.f32.vacc0 %v92_v52, %v92_v52  ;;  %v452_v31 = vunpack.c.l.bf16 %v93_v16  ;;  %v1927_v32 = vcombine.high %v94_v21, %v96_v22 }
  0x4b   :  { %v499_v17 = vrot.slane %v498_v9, 4  ;;  %v510_v18 = vrot.slane %v509_v10, 4  ;;  %v526_v20 = vadd.f32 %v525_v19, %v523_v12  ;;  %293 = vmatpush1.bf16.msra.mxu0 %v1923_v25  ;;  %v480_v33 = vmul.f32 %v449_v28, %v449_v28 }
  0x4c   :  { %2032 = vmatmul.mubr.msk.bf16.vlgmr.msra.gmra.mrb[0].mxu1 %vm142_vm9, %v100_v6  ;;  %v483_v36 = vmul.f32 %v452_v31, %v452_v31  ;;  %294 = vmatprep.subr.bf16.mxu0 %v1927_v32  ;;  %2643 = vmac.bf16.f32.vacc0 %v94_v21, %v94_v21  ;;  %v1926_v51 = vcombine.low %v94_v21, %v96_v22  ;;  %v455_v53 = vunpack.c.l.bf16 %v95_v39 }
  0x4d   :  { %v500_v23 = vadd.f32 %v499_v17, %v498_v9  ;;  %v511_v24 = vadd.f32 %v510_v18, %v509_v10  ;;  %v527_v27 = vrot.slane %v526_v20, 4  ;;  %2041 = vmatprep.mubr.msk.bf16.mxu1 %vm2692_vm6, %v2688_v0  ;;  %2036 = vmatpush3.bf16.msra.mxu1 %v1925_v26  ;;  %v555_v38 = vsel %vm516_vm7, %v480_v33, 0.0  ;;  %v99_v10 = vld [vmem:[%s3006_s0 + $0x74] sm:$0x7] }
  0x4e   :  { %2037 = vmatprep.subr.bf16.mxu1 %v2688_v0  ;;  %v556_v42 = vsel %vm516_vm7, %v483_v36, 0.0  ;;  %v1928_v52 = vcombine.low %v95_v39, %v97_v43  ;;  %2644 = vmac.bf16.f32.vacc0 %v96_v22, %v96_v22  ;;  %v458_v61 = vunpack.c.l.bf16 %v97_v43 }
  0x4f   :  { %v501_v29 = vrot.slane %v500_v23, 2  ;;  %v512_v30 = vrot.slane %v511_v24, 2  ;;  %v528_v8 = vadd.f32 %v527_v27, %v526_v20  ;;  %v557_v46 = vadd.f32 %v556_v42, %v555_v38  ;;  %295 = vmatpush1.bf16.msra.mxu0 %v1926_v51  ;;  %v101_v27 = vld [vmem:[%s3007_s1 + $0x4] sm:$0xf] }
  0x50   :  { %v2645_v55 = vmovacc.add.low.vacc0  ;;  %v486_v63 = vmul.f32 %v455_v53, %v455_v53  ;;  %v1930_v2 = vcombine.high %v98_v49, %v98_v49  ;;  %v459_v3 = vunpack.c.l.bf16 %v98_v49 }
  0x51   :  { %v502_v34 = vadd.f32 %v501_v29, %v500_v23  ;;  %v513_v35 = vadd.f32 %v512_v30, %v511_v24  ;;  %v529_v37 = vrot.slane %v528_v8, 2  ;;  %v2646_v56 = vmovacc.add.high.vacc0  ;;  %2038 = vmatpush3.bf16.msra.mxu1 %v1928_v52 }
  0x52   :  { %v489_v5 = vmul.f32 %v458_v61, %v458_v61  ;;  %v460_v6 = vunpack.c.h.bf16 %v98_v49  ;;  %2039 = vmatprep.subr.bf16.mxu1 %v2688_v0  ;;  %v1929_v9 = vcombine.low %v98_v49, %v98_v49  ;;  %v558_v11 = vsel %vm516_vm7, %v486_v63, 0.0  ;;  %v830_v63 = vld [vmem:[#allocation7 + $0x10] sm:$0xff] }
  0x53   :  { %v503_v40 = vrot.slane %v502_v34, 1  ;;  %v514_v41 = vrot.slane %v513_v35, 1  ;;  %v530_v44 = vadd.f32 %v529_v37, %v528_v8  ;;  %v2647_v57 = vcombine.low %v2645_v55, %v2646_v56 }
  0x54   :  { %v2648_v58 = vcombine.high %v2645_v55, %v2646_v56  ;;  %v287_v12 = vand.u32 %v1930_v2, %v2806_v13  ;;  %v490_v15 = vmul.f32 %v459_v3, %v459_v3  ;;  %v559_v16 = vadd.f32 %v558_v11, %v557_v46  ;;  %v833_v55 = vld [vmem:[#allocation7 + $0x28] sm:$0xff]  ;;  %v831_v56 = vld [vmem:[#allocation7 + $0x18] sm:$0xff]  ;;  %v834_v2 = vld [vmem:[#allocation7 + $0x30] sm:$0xff] }
  0x55   :  { %v504_v47 = vadd.f32 %v503_v40, %v502_v34  ;;  %v515_v48 = vadd.f32 %v514_v41, %v513_v35  ;;  %v531_v50 = vrot.slane %v530_v44, 1  ;;  %v2654_v59 = vrot.slane %v2647_v57, %v2836_v45  ;;  %v837_v3 = vld [vmem:[#allocation7 + $0x48] sm:$0xff]  ;;  %v836_v11 = vld [vmem:[#allocation7 + $0x40] sm:$0xff] }
  0x56   :  { %v2660_v60 = vrot.slane %v2648_v58, %v2836_v45  ;;  %v560_v17 = vsel %vm516_vm7, %v489_v5, 0.0  ;;  %v491_v18 = vmul.f32 %v460_v6, %v460_v6  ;;  %v284_v19 = vand.u32 %v1929_v9, %v2806_v13  ;;  %296 = vmatprep.subr.bf16.mxu0 %v287_v12  ;;  %v835_v58 = vld [vmem:[#allocation7 + $0x38] sm:$0xff]  ;;  %v841_v5 = vld [vmem:[#allocation7 + $0x68] sm:$0xff]  ;;  %v840_v12 = vld [vmem:[#allocation7 + $0x60] sm:$0xff] }
  0x57   :  { %v576_v54 = vcombine.low %v504_v47, %v515_v48  ;;  %v532_v62 = vadd.f32 %v531_v50, %v530_v44  ;;  %v536_v21 = vsel %vm496_vm8, %v490_v15, 0.0  ;;  %v1931_v22 = vcombine.low %v99_v10, %v99_v10  ;;  %v839_v6 = vld [vmem:[#allocation7 + $0x58] sm:$0xff]  ;;  %v838_v15 = vld [vmem:[#allocation7 + $0x50] sm:$0xff] }
  0x58   :  { %v461_v23 = vunpack.c.l.bf16 %v99_v10  ;;  %v561_v24 = vadd.f32 %v560_v17, %v559_v16  ;;  %v537_v25 = vadd.f32 %v2654_v59, %v536_v21  ;;  %v547_v26 = vsel %vm496_vm8, %v491_v18, 0.0  ;;  %297 = vmatpush1.bf16.msra.mxu0 %v284_v19  ;;  %v828_v59 = vld [vmem:[#allocation7] sm:$0xff]  ;;  %v843_v9 = vld [vmem:[#allocation7 + $0x78] sm:$0xff]  ;;  %v842_v17 = vld [vmem:[#allocation7 + $0x70] sm:$0xff] }
  0x59   :  { %v583_v4 = vrot.slane %v576_v54, %v2809_v14  ;;  %v590_v45 = vrot.slane %v532_v62, %v2809_v14  ;;  %v548_v28 = vadd.f32 %v2660_v60, %v547_v26  ;;  %v290_v29 = vand.u32 %v1931_v22, %v2806_v13  ;;  %v829_v54 = vld [vmem:[#allocation7 + $0x8] sm:$0xff]  ;;  %v832_v60 = vld [vmem:[#allocation7 + $0x20] sm:$0xff] }
  0x5a   :  { %v492_v30 = vmul.f32 %v461_v23, %v461_v23  ;;  %v538_v31 = vrot.slane %v537_v25, 4  ;;  %v2045_v57 = vpack.c.bf16 %v833_v55, %v829_v54  ;;  %v2143_v61 = vpack.c.bf16 %v835_v58, %v831_v56  ;;  %v845_v18 = vld [vmem:[#allocation7 + $0x88] sm:$0xff]  ;;  %v847_v23 = vld [vmem:[#allocation7 + $0x98] sm:$0xff]  ;;  %v844_v26 = vld [vmem:[#allocation7 + $0x80] sm:$0xff] }
  0x5b   :  { %v2900_v20 = vcombine.low %v583_v4, %v590_v45  ;;  %v549_v32 = vrot.slane %v548_v28, 4  ;;  %2040 = vmatpush3.bf16.msra.mxu1 %v290_v29  ;;  %1932 = vmatmul.mubr.msk.bf16.vlgmr.msra.gmra.mrb[4].mxu0 %vm142_vm9, %v101_v27  ;;  %v2047_v62 = vpack.c.bf16 %v832_v60, %v828_v59  ;;  %v2145_v4 = vpack.c.bf16 %v834_v2, %v830_v63  ;;  %v849_v19 = vld [vmem:[#allocation7 + $0xa8] sm:$0xff]  ;;  %v866_v54 = vld [vmem:[#allocation7 + $0x130] sm:$0xff]  ;;  %v871_v58 = vld [vmem:[#allocation7 + $0x158] sm:$0xff] }
  0x5c   :  { %v562_v8 = vsel %vm524_vm10, %v492_v30, 0.0  ;;  %v539_v33 = vadd.f32 %v538_v31, %v537_v25  ;;  %2046 = vmatprep.subr.bf16.mxu0 %v2045_v57  ;;  %2144 = vmatprep.subr.bf16.mxu1 %v2143_v61  ;;  %v2049_v10 = vpack.c.bf16 %v841_v5, %v837_v3  ;;  %v2147_v45 = vpack.c.bf16 %v843_v9, %v839_v6  ;;  %v850_v30 = vld [vmem:[#allocation7 + $0xb0] sm:$0xff]  ;;  %v869_v56 = vld [vmem:[#allocation7 + $0x148] sm:$0xff]  ;;  %v875_v60 = vld [vmem:[#allocation7 + $0x178] sm:$0xff] }
  0x5d   :  { %v563_v34 = vadd.f32 %v562_v8, %v561_v24  ;;  %v550_v35 = vadd.f32 %v549_v32, %v548_v28  ;;  %2048 = vmatpush1.bf16.msra.mxu0 %v2047_v62  ;;  %v2051_v16 = vpack.c.bf16 %v840_v12, %v836_v11  ;;  %v2149_v21 = vpack.c.bf16 %v842_v17, %v838_v15  ;;  %v851_v24 = vld [vmem:[#allocation7 + $0xb8] sm:$0xff]  ;;  %v846_v28 = vld [vmem:[#allocation7 + $0x90] sm:$0xff]  ;;  %v853_v32 = vld [vmem:[#allocation7 + $0xc8] sm:$0xff] }
  0x5e   :  { %v540_v36 = vrot.slane %v539_v33, 2  ;;  %2042 = vmatmul.mubr.msk.bf16.vlgmr.msra.gmra.mrb[4].mxu1 %vm142_vm9, %v101_v27  ;;  %2050 = vmatprep.subr.bf16.mxu0 %v2049_v10  ;;  %v2053_v22 = vpack.c.bf16 %v849_v19, %v845_v18  ;;  %v2151_v25 = vpack.c.bf16 %v851_v24, %v847_v23  ;;  %v848_v27 = vld [vmem:[#allocation7 + $0xa0] sm:$0xff]  ;;  %v2153_v31 = vpack.c.bf16 %v850_v30, %v846_v28  ;;  %v857_v8 = vld [vmem:[#allocation7 + $0xe8] sm:$0xff]  ;;  %v870_v3 = vld [vmem:[#allocation7 + $0x150] sm:$0xff] }
  0x5f   :  { %v564_v37 = vrot.slane %v563_v34, 4  ;;  %v551_v38 = vrot.slane %v550_v35, 2  ;;  %2146 = vmatpush1.bf16.msra.mxu1 %v2145_v4  ;;  %v2055_v29 = vpack.c.bf16 %v848_v27, %v844_v26  ;;  %v873_v57 = vld [vmem:[#allocation7 + $0x168] sm:$0xff]  ;;  %v868_v61 = vld [vmem:[#allocation7 + $0x140] sm:$0xff]  ;;  %v2163_v63 = vpack.c.bf16 %v875_v60, %v871_v58  ;;  %v874_v4 = vld [vmem:[#allocation7 + $0x170] sm:$0xff] }
  0x60   :  { %v541_v39 = vadd.f32 %v540_v36, %v539_v33  ;;  %2148 = vmatprep.subr.bf16.mxu1 %v2147_v45  ;;  %v855_v33 = vld [vmem:[#allocation7 + $0xd8] sm:$0xff]  ;;  %v852_v36 = vld [vmem:[#allocation7 + $0xc0] sm:$0xff]  ;;  %v2065_v59 = vpack.c.bf16 %v873_v57, %v869_v56  ;;  %v2165_v5 = vpack.c.bf16 %v874_v4, %v870_v3  ;;  %v877_v6 = vld [vmem:[#allocation7 + $0x188] sm:$0xff]  ;;  %vm417_vm11 = vcmask 1041409  }
  0x61   :  { %v565_v40 = vadd.f32 %v564_v37, %v563_v34  ;;  %v552_v41 = vadd.f32 %v551_v38, %v550_v35  ;;  %2052 = vmatpush1.bf16.msra.mxu0 %v2051_v16  ;;  %v2057_v34 = vpack.c.bf16 %v857_v8, %v853_v32  ;;  %v859_v35 = vld [vmem:[#allocation7 + $0xf8] sm:$0xff]  ;;  %v856_v38 = vld [vmem:[#allocation7 + $0xe0] sm:$0xff]  ;;  %v881_v9 = vld [vmem:[#allocation7 + $0x1a8] sm:$0xff]  ;;  %vm419_vm12 = vcmask 1043459  }
  0x62   :  { %v542_v13 = vrot.slane %v541_v39, 1  ;;  %2054 = vmatprep.subr.bf16.mxu0 %v2053_v22  ;;  %v2155_v37 = vpack.c.bf16 %v859_v35, %v855_v33  ;;  %v872_v62 = vld [vmem:[#allocation7 + $0x160] sm:$0xff]  ;;  %v879_v10 = vld [vmem:[#allocation7 + $0x198] sm:$0xff]  ;;  %v2069_v11 = vpack.c.bf16 %v881_v9, %v877_v6  ;;  %v878_v19 = vld [vmem:[#allocation7 + $0x190] sm:$0xff]  ;;  %vm421_vm13 = vcmask 1045509  }
  0x63   :  { %v566_v42 = vrot.slane %v565_v40, 2  ;;  %v553_v43 = vrot.slane %v552_v41, 1  ;;  %2150 = vmatpush1.bf16.msra.mxu1 %v2149_v21  ;;  %v2067_v2 = vpack.c.bf16 %v872_v62, %v868_v61  ;;  %v883_v12 = vld [vmem:[#allocation7 + $0x1b8] sm:$0xff]  ;;  %v876_v15 = vld [vmem:[#allocation7 + $0x180] sm:$0xff]  ;;  %v882_v21 = vld [vmem:[#allocation7 + $0x1b0] sm:$0xff]  ;;  %vm423_vm14 = vcmask 1047559  }
  0x64   :  { %v543_v44 = vadd.f32 %v542_v13, %v541_v39  ;;  %2152 = vmatprep.subr.bf16.mxu1 %v2151_v25  ;;  %v854_v39 = vld [vmem:[#allocation7 + $0xd0] sm:$0xff]  ;;  %v462_v16 = vld [vmem:[#allocation3] sm:$0x3f]  ;;  %v2167_v17 = vpack.c.bf16 %v883_v12, %v879_v10  ;;  %v880_v18 = vld [vmem:[#allocation7 + $0x1a0] sm:$0xff]  ;;  %v2169_v24 = vpack.c.bf16 %v882_v21, %v878_v19  ;;  %vm2694_vm2 = vmmov 1  }
  0x65   :  { %v567_v46 = vadd.f32 %v566_v42, %v565_v40  ;;  %v554_v47 = vadd.f32 %v553_v43, %v552_v41  ;;  %2056 = vmatpush1.bf16.msra.mxu0 %v2055_v29  ;;  %v858_v40 = vld [vmem:[#allocation7 + $0xf0] sm:$0xff]  ;;  %v2059_v41 = vpack.c.bf16 %v856_v38, %v852_v36  ;;  %v861_v42 = vld [vmem:[#allocation7 + $0x108] sm:$0xff]  ;;  %v2071_v23 = vpack.c.bf16 %v880_v18, %v876_v15  ;;  %v887_v26 = vld [vmem:[#allocation7 + $0x1d8] sm:$0xff] }
  0x66   :  { %2058 = vmatprep.subr.bf16.mxu0 %v2057_v34  ;;  %v2157_v13 = vpack.c.bf16 %v858_v40, %v854_v39  ;;  %v865_v43 = vld [vmem:[#allocation7 + $0x128] sm:$0xff]  ;;  %v891_v29 = vld [vmem:[#allocation7 + $0x1f8] sm:$0xff]  ;;  %v884_v30 = vld [vmem:[#allocation7 + $0x1c0] sm:$0xff] }
  0x67   :  { %v568_v48 = vrot.slane %v567_v46, 1  ;;  %v592_v49 = vcombine.low %v543_v44, %v554_v47  ;;  %2154 = vmatpush1.bf16.msra.mxu1 %v2153_v31  ;;  %v863_v44 = vld [vmem:[#allocation7 + $0x118] sm:$0xff]  ;;  %v885_v25 = vld [vmem:[#allocation7 + $0x1c8] sm:$0xff]  ;;  %v888_v31 = vld [vmem:[#allocation7 + $0x1e0] sm:$0xff] }
  0x68   :  { %2156 = vmatprep.subr.bf16.mxu1 %v2155_v37  ;;  %v867_v47 = vld [vmem:[#allocation7 + $0x138] sm:$0xff]  ;;  %v2075_v8 = vpack.c.bf16 %v888_v31, %v884_v30  ;;  %v886_v33 = vld [vmem:[#allocation7 + $0x1d0] sm:$0xff]  ;;  %v893_v35 = vld [vmem:[#allocation7 + $0x208] sm:$0xff] }
  0x69   :  { %v569_v50 = vadd.f32 %v568_v48, %v567_v46  ;;  %v599_v51 = vrot.slane %v592_v49, %v2809_v14  ;;  %2060 = vmatpush1.bf16.msra.mxu0 %v2059_v41  ;;  %v2061_v46 = vpack.c.bf16 %v865_v43, %v861_v42  ;;  %v860_v48 = vld [vmem:[#allocation7 + $0x100] sm:$0xff]  ;;  %v890_v34 = vld [vmem:[#allocation7 + $0x1f0] sm:$0xff]  ;;  %v897_v38 = vld [vmem:[#allocation7 + $0x228] sm:$0xff] }
  0x6a   :  { %v864_v49 = vld [vmem:[#allocation7 + $0x120] sm:$0xff]  ;;  %v2173_v37 = vpack.c.bf16 %v890_v34, %v886_v33  ;;  %v895_v39 = vld [vmem:[#allocation7 + $0x218] sm:$0xff]  ;;  %v906_v60 = vld [vmem:[#allocation7 + $0x270] sm:$0xff] }
  0x6b   :  { %v606_v52 = vrot.slane %v569_v50, %v2809_v14  ;;  %2158 = vmatpush1.bf16.msra.mxu1 %v2157_v13  ;;  %v2159_v50 = vpack.c.bf16 %v867_v47, %v863_v44  ;;  %2062 = vmatprep.subr.bf16.mxu0 %v2061_v46  ;;  %v899_v40 = vld [vmem:[#allocation7 + $0x238] sm:$0xff]  ;;  %v2077_v13 = vpack.c.bf16 %v897_v38, %v893_v35  ;;  %v892_v43 = vld [vmem:[#allocation7 + $0x200] sm:$0xff]  ;;  %v894_v46 = vld [vmem:[#allocation7 + $0x210] sm:$0xff] }
  0x6c   :  { %v2175_v42 = vpack.c.bf16 %v899_v40, %v895_v39  ;;  %v896_v44 = vld [vmem:[#allocation7 + $0x220] sm:$0xff]  ;;  %v898_v47 = vld [vmem:[#allocation7 + $0x230] sm:$0xff]  ;;  %v909_v61 = vld [vmem:[#allocation7 + $0x288] sm:$0xff] }
  0x6d   :  { %v2913_v53 = vcombine.low %v599_v51, %v606_v52  ;;  %v2063_v51 = vpack.c.bf16 %v864_v49, %v860_v48  ;;  %v862_v52 = vld [vmem:[#allocation7 + $0x110] sm:$0xff]  ;;  %2160 = vmatprep.subr.bf16.mxu1 %v2159_v50  ;;  %v901_v48 = vld [vmem:[#allocation7 + $0x248] sm:$0xff]  ;;  %v2079_v50 = vpack.c.bf16 %v896_v44, %v892_v43  ;;  %v904_v58 = vld [vmem:[#allocation7 + $0x260] sm:$0xff] }
  0x6e   :  { %v2161_v55 = vpack.c.bf16 %v866_v54, %v862_v52  ;;  %v905_v49 = vld [vmem:[#allocation7 + $0x268] sm:$0xff]  ;;  %v903_v52 = vld [vmem:[#allocation7 + $0x258] sm:$0xff]  ;;  %v912_v6 = vld [vmem:[#allocation7 + $0x2a0] sm:$0xff] }
  0x6f   :  { %2064 = vmatpush1.bf16.msra.mxu0 %v2063_v51  ;;  %v610_v45 = vrot.slane %v2913_v53, 7  ;;  %v889_v53 = vld [vmem:[#allocation7 + $0x1e8] sm:$0xff]  ;;  %v2177_v51 = vpack.c.bf16 %v898_v47, %v894_v46  ;;  %v907_v54 = vld [vmem:[#allocation7 + $0x278] sm:$0xff]  ;;  %v2081_v56 = vpack.c.bf16 %v905_v49, %v901_v48  ;;  %v916_v21 = vld [vmem:[#allocation7 + $0x2c0] sm:$0xff] }
  0x70   :  { %2162 = vmatpush1.bf16.msra.mxu1 %v2161_v55  ;;  %2066 = vmatprep.subr.bf16.mxu0 %v2065_v59  ;;  %v2073_v28 = vpack.c.bf16 %v889_v53, %v885_v25  ;;  %v900_v55 = vld [vmem:[#allocation7 + $0x240] sm:$0xff]  ;;  %v2179_v57 = vpack.c.bf16 %v907_v54, %v903_v52  ;;  %v902_v59 = vld [vmem:[#allocation7 + $0x250] sm:$0xff]  ;;  %v913_v62 = vld [vmem:[#allocation7 + $0x2a8] sm:$0xff] }
  0x71   :  { %2164 = vmatprep.subr.bf16.mxu1 %v2163_v63  ;;  %v611_v22 = vsel %vm417_vm11, %v610_v45, %v2900_v20  ;;  %v2171_v20 = vpack.c.bf16 %v891_v29, %v887_v26  ;;  %v911_v63 = vld [vmem:[#allocation7 + $0x298] sm:$0xff]  ;;  %v2083_v3 = vpack.c.bf16 %v904_v58, %v900_v55  ;;  %v2181_v4 = vpack.c.bf16 %v906_v60, %v902_v59  ;;  %v917_v12 = vld [vmem:[#allocation7 + $0x2c8] sm:$0xff]  ;;  %v918_v25 = vld [vmem:[#allocation7 + $0x2d0] sm:$0xff] }
  0x72   :  { %v612_v27 = vsel %vm419_vm12, %v610_v45, %v611_v22  ;;  %v2085_v9 = vpack.c.bf16 %v913_v62, %v909_v61  ;;  %v921_v15 = vld [vmem:[#allocation7 + $0x2e8] sm:$0xff]  ;;  %v920_v22 = vld [vmem:[#allocation7 + $0x2e0] sm:$0xff]  ;;  %v922_v53 = vld [vmem:[#allocation7 + $0x2f0] sm:$0xff] }
  0x73   :  { %2068 = vmatpush1.bf16.msra.mxu0 %v2067_v2  ;;  %v613_v32 = vsel %vm421_vm13, %v610_v45, %v612_v27  ;;  %v915_v2 = vld [vmem:[#allocation7 + $0x2b8] sm:$0xff]  ;;  %v925_v26 = vld [vmem:[#allocation7 + $0x308] sm:$0xff]  ;;  %v2091_v30 = vpack.c.bf16 %v920_v22, %v916_v21  ;;  %v2189_v31 = vpack.c.bf16 %v922_v53, %v918_v25  ;;  %v926_v34 = vld [vmem:[#allocation7 + $0x310] sm:$0xff] }
  0x74   :  { %2166 = vmatpush1.bf16.msra.mxu1 %v2165_v5  ;;  %2070 = vmatprep.subr.bf16.mxu0 %v2069_v11  ;;  %v614_v36 = vsel %vm423_vm14, %v610_v45, %v613_v32  ;;  %v908_v5 = vld [vmem:[#allocation7 + $0x280] sm:$0xff]  ;;  %v2183_v10 = vpack.c.bf16 %v915_v2, %v911_v63  ;;  %v910_v45 = vld [vmem:[#allocation7 + $0x290] sm:$0xff]  ;;  %v929_v27 = vld [vmem:[#allocation7 + $0x328] sm:$0xff] }
  0x75   :  { %2168 = vmatprep.subr.bf16.mxu1 %v2167_v17  ;;  %v616_v41 = vadd.f32 %v614_v36, %v462_v16  ;;  %v914_v11 = vld [vmem:[#allocation7 + $0x2b0] sm:$0xff]  ;;  %v919_v16 = vld [vmem:[#allocation7 + $0x2d8] sm:$0xff]  ;;  %v2087_v18 = vpack.c.bf16 %v912_v6, %v908_v5  ;;  %v924_v32 = vld [vmem:[#allocation7 + $0x300] sm:$0xff] }
  0x76   :  { %v923_v17 = vld [vmem:[#allocation7 + $0x2f8] sm:$0xff]  ;;  %v2185_v19 = vpack.c.bf16 %v914_v11, %v910_v45  ;;  %v930_v35 = vld [vmem:[#allocation7 + $0x330] sm:$0xff]  ;;  %v933_v36 = vld [vmem:[#allocation7 + $0x348] sm:$0xff] }
  0x77   :  { %2072 = vmatpush1.bf16.msra.mxu0 %v2071_v23  ;;  %617 = vst.msk [vmem:[#allocation3] sm:$0x3f] %vm2781_vm4, %v616_v41  ;;  %v2089_v23 = vpack.c.bf16 %v921_v15, %v917_v12  ;;  %v931_v29 = vld [vmem:[#allocation7 + $0x338] sm:$0xff]  ;;  %v2193_v41 = vpack.c.bf16 %v930_v35, %v926_v34  ;;  %v934_v46 = vld [vmem:[#allocation7 + $0x350] sm:$0xff]  ;;  %v941_v48 = vld [vmem:[#allocation7 + $0x388] sm:$0xff] }
  0x78   :  { %2170 = vmatpush1.bf16.msra.mxu1 %v2169_v24  ;;  %2074 = vmatprep.subr.bf16.mxu0 %v2073_v28  ;;  %v2187_v24 = vpack.c.bf16 %v923_v17, %v919_v16  ;;  %v927_v28 = vld [vmem:[#allocation7 + $0x318] sm:$0xff]  ;;  %v938_v47 = vld [vmem:[#allocation7 + $0x370] sm:$0xff]  ;;  %v945_v49 = vld [vmem:[#allocation7 + $0x3a8] sm:$0xff] }
  0x79   :  { %2172 = vmatprep.subr.bf16.mxu1 %v2171_v20  ;;  %v928_v20 = vld [vmem:[#allocation7 + $0x320] sm:$0xff]  ;;  %v2191_v33 = vpack.c.bf16 %v931_v29, %v927_v28  ;;  %v935_v38 = vld [vmem:[#allocation7 + $0x358] sm:$0xff]  ;;  %v2197_v54 = vpack.c.bf16 %v938_v47, %v934_v46  ;;  %v942_v59 = vld [vmem:[#allocation7 + $0x390] sm:$0xff] }
  0x7a   :  { %v939_v39 = vld [vmem:[#allocation7 + $0x378] sm:$0xff]  ;;  %v2095_v40 = vpack.c.bf16 %v928_v20, %v924_v32  ;;  %v940_v55 = vld [vmem:[#allocation7 + $0x380] sm:$0xff]  ;;  %v946_v60 = vld [vmem:[#allocation7 + $0x3b0] sm:$0xff] }
  0x7b   :  { %2076 = vmatpush1.bf16.msra.mxu0 %v2075_v8  ;;  %v2093_v8 = vpack.c.bf16 %v929_v27, %v925_v26  ;;  %v2195_v44 = vpack.c.bf16 %v939_v39, %v935_v38  ;;  %v949_v61 = vld [vmem:[#allocation7 + $0x3c8] sm:$0xff]  ;;  %v951_v63 = vld [vmem:[#allocation7 + $0x3d8] sm:$0xff]  ;;  %v948_v5 = vld [vmem:[#allocation7 + $0x3c0] sm:$0xff] }
  0x7c   :  { %2174 = vmatpush1.bf16.msra.mxu1 %v2173_v37  ;;  %2078 = vmatprep.subr.bf16.mxu0 %v2077_v13  ;;  %v937_v37 = vld [vmem:[#allocation7 + $0x368] sm:$0xff]  ;;  %v932_v13 = vld [vmem:[#allocation7 + $0x340] sm:$0xff]  ;;  %v955_v2 = vld [vmem:[#allocation7 + $0x3f8] sm:$0xff] }
  0x7d   :  { %2176 = vmatprep.subr.bf16.mxu1 %v2175_v42  ;;  %v936_v42 = vld [vmem:[#allocation7 + $0x360] sm:$0xff]  ;;  %v2097_v43 = vpack.c.bf16 %v937_v37, %v933_v36  ;;  %v953_v62 = vld [vmem:[#allocation7 + $0x3e8] sm:$0xff]  ;;  %v950_v45 = vld [vmem:[#allocation7 + $0x3d0] sm:$0xff] }
  0x7e   :  { %v2099_v52 = vpack.c.bf16 %v936_v42, %v932_v13  ;;  %v2105_v6 = vpack.c.bf16 %v953_v62, %v949_v61  ;;  %v954_v11 = vld [vmem:[#allocation7 + $0x3f0] sm:$0xff]  ;;  %v957_v16 = vld [vmem:[#allocation7 + $0x408] sm:$0xff]  ;;  %v963_v21 = vld [vmem:[#allocation7 + $0x438] sm:$0xff] }
  0x7f   :  { %2080 = vmatpush1.bf16.msra.mxu0 %v2079_v50  ;;  %v943_v50 = vld [vmem:[#allocation7 + $0x398] sm:$0xff]  ;;  %v2205_v15 = vpack.c.bf16 %v954_v11, %v950_v45  ;;  %v961_v17 = vld [vmem:[#allocation7 + $0x428] sm:$0xff]  ;;  %vm2944_vm3 = vmpackc.low %vm73_vm0, %vm2694_vm2 }
  0x80   :  { %2178 = vmatpush1.bf16.msra.mxu1 %v2177_v51  ;;  %2082 = vmatprep.subr.bf16.mxu0 %v2081_v56  ;;  %v947_v51 = vld [vmem:[#allocation7 + $0x3b8] sm:$0xff]  ;;  %v944_v56 = vld [vmem:[#allocation7 + $0x3a0] sm:$0xff] }
  0x81   :  { %2180 = vmatprep.subr.bf16.mxu1 %v2179_v57  ;;  %v2101_v57 = vpack.c.bf16 %v945_v49, %v941_v48  ;;  %v2199_v58 = vpack.c.bf16 %v947_v51, %v943_v50  ;;  %v373_v46 = vld [vmem:[#allocation2] sm:$0x3f] }
  0x82   :  { %v967_v45 = vld [vmem:[#allocation7 + $0x458] sm:$0xff] }
  0x83   :  { %2084 = vmatpush1.bf16.msra.mxu0 %v2083_v3  ;;  %v2103_v3 = vpack.c.bf16 %v944_v56, %v940_v55  ;;  %v623_v55 = vld [vmem:[#allocation3] sm:$0x3f] }
  0x84   :  { %2182 = vmatpush1.bf16.msra.mxu1 %v2181_v4  ;;  %2086 = vmatprep.subr.bf16.mxu0 %v2085_v9  ;;  %v2201_v4 = vpack.c.bf16 %v946_v60, %v942_v59  ;;  %v2203_v9 = vpack.c.bf16 %v955_v2, %v951_v63  ;;  %v960_v2 = vld [vmem:[#allocation7 + $0x420] sm:$0xff]  ;;  %v971_v11 = vld [vmem:[#allocation7 + $0x478] sm:$0xff] }
  0x85   :  { %2184 = vmatprep.subr.bf16.mxu1 %v2183_v10  ;;  %v952_v10 = vld [vmem:[#allocation7 + $0x3e0] sm:$0xff] }
  0x86   :  { %v2107_v12 = vpack.c.bf16 %v952_v10, %v948_v5  ;;  %v962_v5 = vld [vmem:[#allocation7 + $0x430] sm:$0xff]  ;;  %v969_v10 = vld [vmem:[#allocation7 + $0x468] sm:$0xff] }
  0x87   :  { %2088 = vmatpush1.bf16.msra.mxu0 %v2087_v18  ;;  %v959_v18 = vld [vmem:[#allocation7 + $0x418] sm:$0xff] }
  0x88   :  { %2186 = vmatpush1.bf16.msra.mxu1 %v2185_v19  ;;  %2090 = vmatprep.subr.bf16.mxu0 %v2089_v23  ;;  %v2109_v19 = vpack.c.bf16 %v961_v17, %v957_v16  ;;  %v2207_v22 = vpack.c.bf16 %v963_v21, %v959_v18  ;;  %v964_v17 = vld [vmem:[#allocation7 + $0x440] sm:$0xff]  ;;  %v2211_v21 = vpack.c.bf16 %v971_v11, %v967_v45  ;;  %v1005_v45 = vld [vmem:[#allocation7 + $0x588] sm:$0xff] }
  0x89   :  { %2188 = vmatprep.subr.bf16.mxu1 %v2187_v24  ;;  %v968_v18 = vld [vmem:[#allocation7 + $0x460] sm:$0xff]  ;;  %v1009_v11 = vld [vmem:[#allocation7 + $0x5a8] sm:$0xff] }
  0x8b   :  { %2092 = vmatpush1.bf16.msra.mxu0 %v2091_v30 }
  0x8c   :  { %2190 = vmatpush1.bf16.msra.mxu1 %v2189_v31  ;;  %2094 = vmatprep.subr.bf16.mxu0 %v2093_v8 }
  0x8d   :  { %2192 = vmatprep.subr.bf16.mxu1 %v2191_v33 }
  0x8f   :  { %2096 = vmatpush1.bf16.msra.mxu0 %v2095_v40 }
  0x90   :  { %2194 = vmatpush1.bf16.msra.mxu1 %v2193_v41  ;;  %2098 = vmatprep.subr.bf16.mxu0 %v2097_v43 }
  0x91   :  { %2196 = vmatprep.subr.bf16.mxu1 %v2195_v44 }
  0x93   :  { %2100 = vmatpush1.bf16.msra.mxu0 %v2099_v52 }
  0x94   :  { %2198 = vmatpush1.bf16.msra.mxu1 %v2197_v54  ;;  %2102 = vmatprep.subr.bf16.mxu0 %v2101_v57 }
  0x95   :  { %2200 = vmatprep.subr.bf16.mxu1 %v2199_v58 }
  0x97   :  { %2104 = vmatpush1.bf16.msra.mxu0 %v2103_v3 }
  0x98   :  { %2202 = vmatpush1.bf16.msra.mxu1 %v2201_v4  ;;  %2106 = vmatprep.subr.bf16.mxu0 %v2105_v6  ;;  %v958_v4 = vld [vmem:[#allocation7 + $0x410] sm:$0xff]  ;;  %v965_v6 = vld [vmem:[#allocation7 + $0x448] sm:$0xff] }
  0x99   :  { %2204 = vmatprep.subr.bf16.mxu1 %v2203_v9  ;;  %v2209_v16 = vpack.c.bf16 %v962_v5, %v958_v4  ;;  %v1000_v4 = vld [vmem:[#allocation7 + $0x560] sm:$0xff] }
  0x9b   :  { %2108 = vmatpush1.bf16.msra.mxu0 %v2107_v12 }
  0x9c   :  { %2206 = vmatpush1.bf16.msra.mxu1 %v2205_v15  ;;  %2110 = vmatprep.subr.bf16.mxu0 %v2109_v19  ;;  %v2111_v15 = vpack.c.bf16 %v960_v2, %v956_v1  ;;  %v2113_v19 = vpack.c.bf16 %v969_v10, %v965_v6  ;;  %v996_v2 = vld [vmem:[#allocation7 + $0x540] sm:$0xff]  ;;  %v1002_v10 = vld [vmem:[#allocation7 + $0x570] sm:$0xff] }
  0x9d   :  { %2208 = vmatprep.subr.bf16.mxu1 %v2207_v22  ;;  %v966_v22 = vld [vmem:[#allocation7 + $0x450] sm:$0xff] }
 0x11c   :  { %v193_v23 = vpop.f32.mrb[0].mxu0 }
 0x11d   :  { %v195_v24 = vpop.f32.mrb[1].mxu0 }
 0x11e   :  { %v380_v25 = vcombine.low %v193_v23, %v195_v24  ;;  %v197_v26 = vpop.f32.mrb[2].mxu0  ;;  %v970_v23 = vld [vmem:[#allocation7 + $0x470] sm:$0xff]  ;;  %v973_v24 = vld [vmem:[#allocation7 + $0x488] sm:$0xff] }
 0x11f   :  { %v234_v53 = vpop.f32.mrb[0].mxu1  ;;  %v198_v29 = vpop.f32.mrb[3].mxu0  ;;  %v979_v26 = vld [vmem:[#allocation7 + $0x4b8] sm:$0xff] }
 0x120   :  { %v394_v27 = vrot.slane %v234_v53, %v2809_v14  ;;  %v2033_v28 = vpop.f32.mrb[1].mxu1  ;;  %v387_v30 = vrot.slane %v380_v25, %v2809_v14  ;;  %v977_v25 = vld [vmem:[#allocation7 + $0x4a8] sm:$0xff]  ;;  %v975_v53 = vld [vmem:[#allocation7 + $0x498] sm:$0xff]  ;;  %v972_v29 = vld [vmem:[#allocation7 + $0x480] sm:$0xff] }
 0x121   :  { %v237_v31 = vpop.f32.mrb[2].mxu1  ;;  %v2213_v28 = vpack.c.bf16 %v970_v23, %v966_v22  ;;  %v1006_v23 = vld [vmem:[#allocation7 + $0x590] sm:$0xff] }
 0x122   :  { %v2034_v32 = vpop.f32.mrb[3].mxu1  ;;  %v395_v20 = vcombine.low %v387_v30, %v394_v27  ;;  %v2115_v27 = vpack.c.bf16 %v968_v18, %v964_v17  ;;  %v976_v30 = vld [vmem:[#allocation7 + $0x4a0] sm:$0xff]  ;;  %v2117_v31 = vpack.c.bf16 %v977_v25, %v973_v24  ;;  %v1010_v24 = vld [vmem:[#allocation7 + $0x5b0] sm:$0xff]  ;;  %v1013_v25 = vld [vmem:[#allocation7 + $0x5c8] sm:$0xff] }
 0x123   :  { %v2215_v32 = vpack.c.bf16 %v979_v26, %v975_v53  ;;  %v1004_v18 = vld [vmem:[#allocation7 + $0x580] sm:$0xff]  ;;  %v1017_v53 = vld [vmem:[#allocation7 + $0x5e8] sm:$0x3]  ;;  %v1015_v26 = vld [vmem:[#allocation7 + $0x5d8] sm:$0xff] }
 0x12e   :  { %v326_v8 = vpop.f32.mrb[4].mxu0 }
 0x12f   :  { %v328_v33 = vpop.f32.mrb[5].mxu0 }
 0x130   :  { %v396_v34 = vcombine.low %v326_v8, %v328_v33  ;;  %v330_v35 = vpop.f32.mrb[6].mxu0  ;;  %v978_v8 = vld [vmem:[#allocation7 + $0x4b0] sm:$0xff]  ;;  %v981_v33 = vld [vmem:[#allocation7 + $0x4c8] sm:$0xff] }
 0x131   :  { %v367_v36 = vpop.f32.mrb[4].mxu1  ;;  %v331_v37 = vpop.f32.mrb[7].mxu0  ;;  %v983_v35 = vld [vmem:[#allocation7 + $0x4d8] sm:$0xff] }
 0x132   :  { %v410_v38 = vrot.slane %v367_v36, %v2809_v14  ;;  %v403_v39 = vrot.slane %v396_v34, %v2809_v14  ;;  %v2043_v40 = vpop.f32.mrb[5].mxu1  ;;  %v985_v34 = vld [vmem:[#allocation7 + $0x4e8] sm:$0xff]  ;;  %v987_v36 = vld [vmem:[#allocation7 + $0x4f8] sm:$0xff]  ;;  %v2119_v37 = vpack.c.bf16 %v976_v30, %v972_v29  ;;  %v2233_v29 = vpack.c.bf16 %v1010_v24, %v1006_v23 }
 0x133   :  { %v370_v41 = vpop.f32.mrb[6].mxu1  ;;  %v984_v40 = vld [vmem:[#allocation7 + $0x4e0] sm:$0xff] }
 0x134   :  { %v411_v13 = vcombine.low %v403_v39, %v410_v38  ;;  %v2044_v42 = vpop.f32.mrb[7].mxu1  ;;  %v980_v39 = vld [vmem:[#allocation7 + $0x4c0] sm:$0xff]  ;;  %v2121_v41 = vpack.c.bf16 %v985_v34, %v981_v33  ;;  %v1014_v33 = vld [vmem:[#allocation7 + $0x5d0] sm:$0xff] }
 0x135   :  { %v982_v42 = vld [vmem:[#allocation7 + $0x4d0] sm:$0xff] }
 0x136   :  { %v416_v43 = vrot.slane %v411_v13, 7  ;;  %v2219_v13 = vpack.c.bf16 %v987_v36, %v983_v35  ;;  %v1018_v34 = vld [vmem:[#allocation7 + $0x5f0] sm:$0x3]  ;;  %v637_v35 = vld [vmem:[#allocation4 + $0x8] sm:$0xff] }
 0x137   :  { %v641_v36 = vld [vmem:[#allocation4 + $0x28] sm:$0xff] }
 0x138   :  { %v418_v44 = vsel %vm417_vm11, %v416_v43, %v395_v20  ;;  %v974_v20 = vld [vmem:[#allocation7 + $0x490] sm:$0xff] }
 0x139   :  { %v420_v47 = vsel %vm419_vm12, %v416_v43, %v418_v44  ;;  %v2217_v38 = vpack.c.bf16 %v978_v8, %v974_v20  ;;  %v989_v44 = vld [vmem:[#allocation7 + $0x508] sm:$0xff]  ;;  %v2137_v20 = vpack.c.bf16 %v1017_v53, %v1013_v25  ;;  %v660_v25 = vld [vmem:[#allocation4 + $0xc0] sm:$0xff] }
 0x13a   :  { %v422_v48 = vsel %vm421_vm13, %v416_v43, %v420_v47  ;;  %v991_v47 = vld [vmem:[#allocation7 + $0x518] sm:$0xff]  ;;  %v664_v53 = vld [vmem:[#allocation4 + $0xe0] sm:$0xff] }
 0x13b   :  { %v424_v49 = vsel %vm423_vm14, %v416_v43, %v422_v48  ;;  %v986_v43 = vld [vmem:[#allocation7 + $0x4f0] sm:$0xff]  ;;  %v995_v48 = vld [vmem:[#allocation7 + $0x538] sm:$0xff] }
 0x13c   :  { %v426_v50 = vadd.f32 %v424_v49, %v373_v46  ;;  %v993_v46 = vld [vmem:[#allocation7 + $0x528] sm:$0xff]  ;;  %v2123_v49 = vpack.c.bf16 %v984_v40, %v980_v39  ;;  %v2238_v40 = vpack.c.bf16 %v1018_v34, %v1014_v33 }
 0x13e   :  { %431 = vst.msk [vmem:[#allocation2] sm:$0x3f] %vm2781_vm4, %v426_v50  ;;  %v2221_v50 = vpack.c.bf16 %v986_v43, %v982_v42  ;;  %v636_v43 = vld [vmem:[#allocation4] sm:$0xff] }
 0x145   :  { %v621_v51 = vld [vmem:[#allocation2] sm:$0x3f] }
 0x146   :  { %v2933_v52 = vmul.f32 0.027027028, %v621_v51  ;;  %v988_v51 = vld [vmem:[#allocation7 + $0x500] sm:$0xff] }
 0x148   :  { %v624_v54 = vmul.f32 37.0, %v2933_v52 }
 0x14a   :  { %v625_v56 = vmul.f32 %v624_v54, %v2933_v52  ;;  %v992_v54 = vld [vmem:[#allocation7 + $0x520] sm:$0xff] }
 0x14c   :  { %v626_v57 = vsub.f32 %v623_v55, %v625_v56  ;;  %v2125_v55 = vpack.c.bf16 %v993_v46, %v989_v44  ;;  %v2223_v56 = vpack.c.bf16 %v995_v48, %v991_v47  ;;  %v640_v44 = vld [vmem:[#allocation4 + $0x20] sm:$0xff]  ;;  %v2956_v46 = vrot.slane %v2933_v52, %v2809_v14  ;;  %v638_v47 = vld [vmem:[#allocation4 + $0x10] sm:$0xff] }
 0x14d   :  { %v642_v48 = vld [vmem:[#allocation4 + $0x30] sm:$0xff] }
 0x14e   :  { %v627_v58 = vmul.f32 0.027777778, %v626_v57  ;;  %v990_v57 = vld [vmem:[#allocation7 + $0x510] sm:$0xff] }
 0x150   :  { %v628_v59 = vmax.f32 %v627_v58, 0.0  ;;  %v994_v58 = vld [vmem:[#allocation7 + $0x530] sm:$0xff] }
 0x151   :  { %v2225_v1 = vpack.c.bf16 %v994_v58, %v990_v57  ;;  %v644_v57 = vld [vmem:[#allocation4 + $0x40] sm:$0xff] }
 0x152   :  { %2545 = vrsqrt.f32 %v628_v59  ;;  %vm631_vm15 = vcmp.eq.f32.partialorder %v628_v59, inf  ;;  %v634_v62 = vand.u32 2147483648, %v628_v59  ;;  %vm633_vm1 = vcmp.eq.f32.partialorder %v628_v59, 0.0  ;;  %v648_v58 = vld [vmem:[#allocation4 + $0x60] sm:$0xff] }
 0x15c   :  { %v2546_v60 = vpop.eup %2545 }
 0x15d   :  { %v630_v61 = vmul.f32 %v2546_v60, %v628_v59  ;;  %v1001_v60 = vld [vmem:[#allocation7 + $0x568] sm:$0xff] }
 0x15f   :  { %v632_v63 = vsel %vm631_vm15, %v628_v59, %v630_v61  ;;  %v997_v59 = vld [vmem:[#allocation7 + $0x548] sm:$0xff]  ;;  %v999_v61 = vld [vmem:[#allocation7 + $0x558] sm:$0xff] }
 0x160   :  { %v2937_v3 = vsel %vm633_vm1, %v634_v62, %v632_v63  ;;  %v1003_v62 = vld [vmem:[#allocation7 + $0x578] sm:$0xff]  ;;  %v2127_v63 = vpack.c.bf16 %v992_v54, %v988_v51  ;;  %v2129_v5 = vpack.c.bf16 %v1001_v60, %v997_v59  ;;  %v2243_v54 = vpack.c.bf16 %v640_v44, %v636_v43  ;;  %v646_v59 = vld [vmem:[#allocation4 + $0x50] sm:$0xff] }
 0x161   :  { %v1028_v9 = vrot.slane %v2937_v3, %v2809_v14  ;;  %v2227_v6 = vpack.c.bf16 %v1003_v62, %v999_v61  ;;  %v647_v51 = vld [vmem:[#allocation4 + $0x58] sm:$0xff]  ;;  %v1353_v60 = vcombine.high %v2956_v46, %v2956_v46 }
 0x163   :  { %v1036_v12 = vcombine.high %v1028_v9, %v1028_v9 }
 0x165   :  { %1117 = vmatprep.mubr.f32.mxu0 %v1036_v12  ;;  %1259 = vmatprep.mubr.f32.mxu1 %v1036_v12  ;;  %v1007_v12 = vld [vmem:[#allocation7 + $0x598] sm:$0xff] }
 0x166   :  { %1118 = vmatmul.mubr.f32.vlgmr.msra.gmra.mrb[8].mxu0 %v1028_v9  ;;  %1260 = vmatmul.mubr.f32.vlgmr.msra.gmra.mrb[8].mxu1 %v1028_v9  ;;  %v998_v9 = vld [vmem:[#allocation7 + $0x550] sm:$0xff] }
 0x167   :  { %2112 = vmatpush1.bf16.msra.mxu0 %v2111_v15  ;;  %2210 = vmatpush1.bf16.msra.mxu1 %v2209_v16  ;;  %v1011_v15 = vld [vmem:[#allocation7 + $0x5b8] sm:$0xff]  ;;  %v2131_v16 = vpack.c.bf16 %v1000_v4, %v996_v2  ;;  %v2229_v17 = vpack.c.bf16 %v1002_v10, %v998_v9  ;;  %v657_v2 = vld [vmem:[#allocation4 + $0xa8] sm:$0xff] }
 0x168   :  { %2114 = vmatprep.subr.bf16.mxu0 %v2113_v19  ;;  %2212 = vmatprep.subr.bf16.mxu1 %v2211_v21  ;;  %v1008_v19 = vld [vmem:[#allocation7 + $0x5a0] sm:$0xff]  ;;  %v2133_v21 = vpack.c.bf16 %v1009_v11, %v1005_v45  ;;  %v2231_v22 = vpack.c.bf16 %v1011_v15, %v1007_v12  ;;  %v655_v4 = vld [vmem:[#allocation4 + $0x98] sm:$0xff]  ;;  %v654_v12 = vld [vmem:[#allocation4 + $0x90] sm:$0xff] }
 0x169   :  { %1188 = vmatprep.mubr.f32.mxu0 %v2688_v0  ;;  %1330 = vmatprep.mubr.f32.mxu1 %v2688_v0  ;;  %v652_v45 = vld [vmem:[#allocation4 + $0x80] sm:$0xff] }
 0x16a   :  { %v656_v11 = vld [vmem:[#allocation4 + $0xa0] sm:$0xff] }
 0x16b   :  { %2116 = vmatpush1.bf16.msra.mxu0 %v2115_v27  ;;  %2214 = vmatpush1.bf16.msra.mxu1 %v2213_v28  ;;  %v1019_v27 = vld [vmem:[#allocation7 + $0x5f8] sm:$0x3]  ;;  %v2135_v28 = vpack.c.bf16 %v1008_v19, %v1004_v18  ;;  %v665_v18 = vld [vmem:[#allocation4 + $0xe8] sm:$0xff] }
 0x16c   :  { %2118 = vmatprep.subr.bf16.mxu0 %v2117_v31  ;;  %2216 = vmatprep.subr.bf16.mxu1 %v2215_v32  ;;  %v1012_v31 = vld [vmem:[#allocation7 + $0x5c0] sm:$0xff]  ;;  %v2235_v8 = vpack.c.bf16 %v1019_v27, %v1015_v26  ;;  %v663_v19 = vld [vmem:[#allocation4 + $0xd8] sm:$0xff]  ;;  %v662_v26 = vld [vmem:[#allocation4 + $0xd0] sm:$0xff] }
 0x16d   :  { %v1016_v32 = vld [vmem:[#allocation7 + $0x5e0] sm:$0x3] }
 0x16e   :  { %v2140_v39 = vpack.c.bf16 %v1016_v32, %v1012_v31  ;;  %v673_v31 = vld [vmem:[#allocation4 + $0x128] sm:$0xff]  ;;  %v671_v32 = vld [vmem:[#allocation4 + $0x118] sm:$0xff] }
 0x16f   :  { %2120 = vmatpush1.bf16.msra.mxu0 %v2119_v37  ;;  %2218 = vmatpush1.bf16.msra.mxu1 %v2217_v38  ;;  %v639_v37 = vld [vmem:[#allocation4 + $0x18] sm:$0xff] }
 0x170   :  { %2122 = vmatprep.subr.bf16.mxu0 %v2121_v41  ;;  %2220 = vmatprep.subr.bf16.mxu1 %v2219_v13  ;;  %v643_v38 = vld [vmem:[#allocation4 + $0x38] sm:$0xff]  ;;  %v1021_v41 = vcombine.high %v2937_v3, %v2937_v3  ;;  %v2241_v13 = vpack.c.bf16 %v641_v36, %v637_v35  ;;  %v668_v35 = vld [vmem:[#allocation4 + $0x100] sm:$0xff] }
 0x171   :  { %v2339_v42 = vpack.c.bf16 %v643_v38, %v639_v37  ;;  %v651_v3 = vld [vmem:[#allocation4 + $0x78] sm:$0xff]  ;;  %v672_v36 = vld [vmem:[#allocation4 + $0x120] sm:$0xff]  ;;  %v670_v37 = vld [vmem:[#allocation4 + $0x110] sm:$0xff] }
 0x172   :  { %v2343_v62 = vpack.c.bf16 %v651_v3, %v647_v51  ;;  %v2259_v43 = vpack.c.bf16 %v672_v36, %v668_v35  ;;  %v682_v3 = vld [vmem:[#allocation4 + $0x170] sm:$0xff] }
 0x173   :  { %2124 = vmatpush1.bf16.msra.mxu0 %v2123_v49  ;;  %2222 = vmatpush1.bf16.msra.mxu1 %v2221_v50  ;;  %v645_v49 = vld [vmem:[#allocation4 + $0x48] sm:$0xff] }
 0x174   :  { %2126 = vmatprep.subr.bf16.mxu0 %v2125_v55  ;;  %2224 = vmatprep.subr.bf16.mxu1 %v2223_v56  ;;  %v649_v50 = vld [vmem:[#allocation4 + $0x68] sm:$0xff]  ;;  %v1035_v55 = vrot.slane %v1021_v41, %v2809_v14  ;;  %v2341_v56 = vpack.c.bf16 %v642_v48, %v638_v47  ;;  %v676_v48 = vld [vmem:[#allocation4 + $0x140] sm:$0xff] }
 0x175   :  { %v2245_v61 = vpack.c.bf16 %v649_v50, %v645_v49  ;;  %v681_v41 = vld [vmem:[#allocation4 + $0x168] sm:$0xff]  ;;  %v680_v49 = vld [vmem:[#allocation4 + $0x160] sm:$0xff]  ;;  %v678_v50 = vld [vmem:[#allocation4 + $0x150] sm:$0xff] }
 0x177   :  { %2128 = vmatpush1.bf16.msra.mxu0 %v2127_v63  ;;  %2226 = vmatpush1.bf16.msra.mxu1 %v2225_v1  ;;  %v650_v63 = vld [vmem:[#allocation4 + $0x70] sm:$0xff]  ;;  %v653_v1 = vld [vmem:[#allocation4 + $0x88] sm:$0xff] }
 0x178   :  { %2130 = vmatprep.subr.bf16.mxu0 %v2129_v5  ;;  %2228 = vmatprep.subr.bf16.mxu1 %v2227_v6  ;;  %v659_v5 = vld [vmem:[#allocation4 + $0xb8] sm:$0xff]  ;;  %v2247_v6 = vpack.c.bf16 %v648_v58, %v644_v57  ;;  %v2345_v9 = vpack.c.bf16 %v650_v63, %v646_v59  ;;  %v2249_v10 = vpack.c.bf16 %v657_v2, %v653_v1  ;;  %v686_v63 = vld [vmem:[#allocation4 + $0x190] sm:$0xff] }
 0x179   :  { %v2347_v15 = vpack.c.bf16 %v659_v5, %v655_v4  ;;  %v691_v57 = vld [vmem:[#allocation4 + $0x1b8] sm:$0xff]  ;;  %v2263_v58 = vpack.c.bf16 %v680_v49, %v676_v48  ;;  %v2361_v59 = vpack.c.bf16 %v682_v3, %v678_v50  ;;  %v690_v2 = vld [vmem:[#allocation4 + $0x1b0] sm:$0xff]  ;;  %v693_v4 = vld [vmem:[#allocation4 + $0x1c8] sm:$0xff] }
 0x17a   :  { %v697_v5 = vld [vmem:[#allocation4 + $0x1e8] sm:$0xff]  ;;  %v716_v50 = vld [vmem:[#allocation4 + $0x280] sm:$0xff]  ;;  %v718_v3 = vld [vmem:[#allocation4 + $0x290] sm:$0xff] }
 0x17b   :  { %2132 = vmatpush1.bf16.msra.mxu0 %v2131_v16  ;;  %2230 = vmatpush1.bf16.msra.mxu1 %v2229_v17  ;;  %v658_v16 = vld [vmem:[#allocation4 + $0xb0] sm:$0xff]  ;;  %v661_v17 = vld [vmem:[#allocation4 + $0xc8] sm:$0xff] }
 0x17c   :  { %2134 = vmatprep.subr.bf16.mxu0 %v2133_v21  ;;  %2232 = vmatprep.subr.bf16.mxu1 %v2231_v22  ;;  %v667_v21 = vld [vmem:[#allocation4 + $0xf8] sm:$0xff]  ;;  %v2251_v22 = vpack.c.bf16 %v656_v11, %v652_v45  ;;  %v2349_v23 = vpack.c.bf16 %v658_v16, %v654_v12  ;;  %v2253_v24 = vpack.c.bf16 %v665_v18, %v661_v17  ;;  %v692_v12 = vld [vmem:[#allocation4 + $0x1c0] sm:$0xff]  ;;  %v694_v16 = vld [vmem:[#allocation4 + $0x1d0] sm:$0xff] }
 0x17d   :  { %v2351_v27 = vpack.c.bf16 %v667_v21, %v663_v19  ;;  %v2365_v45 = vpack.c.bf16 %v690_v2, %v686_v63  ;;  %v2269_v11 = vpack.c.bf16 %v697_v5, %v693_v4  ;;  %v698_v18 = vld [vmem:[#allocation4 + $0x1f0] sm:$0xff]  ;;  %v701_v19 = vld [vmem:[#allocation4 + $0x208] sm:$0xff]  ;;  %v724_v63 = vld [vmem:[#allocation4 + $0x2c0] sm:$0xff] }
 0x17e   :  { %v705_v21 = vld [vmem:[#allocation4 + $0x228] sm:$0xff]  ;;  %v726_v2 = vld [vmem:[#allocation4 + $0x2d0] sm:$0xff] }
 0x17f   :  { %2136 = vmatpush1.bf16.msra.mxu0 %v2135_v28  ;;  %2234 = vmatpush1.bf16.msra.mxu1 %v2233_v29  ;;  %v666_v28 = vld [vmem:[#allocation4 + $0xf0] sm:$0xff]  ;;  %v669_v29 = vld [vmem:[#allocation4 + $0x108] sm:$0xff] }
 0x180   :  { %2139 = vmatprep.subr.msk.bf16.mxu0 %vm2944_vm3, %v2137_v20  ;;  %2237 = vmatprep.subr.msk.bf16.mxu1 %vm2944_vm3, %v2235_v8  ;;  %v675_v20 = vld [vmem:[#allocation4 + $0x138] sm:$0xff]  ;;  %v2255_v8 = vpack.c.bf16 %v664_v53, %v660_v25  ;;  %v2353_v33 = vpack.c.bf16 %v666_v28, %v662_v26  ;;  %v2257_v34 = vpack.c.bf16 %v673_v31, %v669_v29  ;;  %v700_v26 = vld [vmem:[#allocation4 + $0x200] sm:$0xff]  ;;  %v702_v28 = vld [vmem:[#allocation4 + $0x210] sm:$0xff] }
 0x181   :  { %v2355_v38 = vpack.c.bf16 %v675_v20, %v671_v32  ;;  %v2369_v25 = vpack.c.bf16 %v698_v18, %v694_v16  ;;  %v2273_v53 = vpack.c.bf16 %v705_v21, %v701_v19  ;;  %v706_v31 = vld [vmem:[#allocation4 + $0x230] sm:$0xff]  ;;  %v709_v32 = vld [vmem:[#allocation4 + $0x248] sm:$0xff]  ;;  %v732_v16 = vld [vmem:[#allocation4 + $0x300] sm:$0xff] }
 0x182   :  { %v713_v20 = vld [vmem:[#allocation4 + $0x268] sm:$0xff]  ;;  %v2373_v35 = vpack.c.bf16 %v706_v31, %v702_v28  ;;  %v730_v5 = vld [vmem:[#allocation4 + $0x2f0] sm:$0xff]  ;;  %v740_v28 = vld [vmem:[#allocation4 + $0x340] sm:$0xff] }
 0x183   :  { %2142 = vmatpush1.bf16.msk.msra.mxu0 %vm2944_vm3, %v2140_v39  ;;  %2240 = vmatpush1.bf16.msk.msra.mxu1 %vm2944_vm3, %v2238_v40  ;;  %v674_v39 = vld [vmem:[#allocation4 + $0x130] sm:$0xff]  ;;  %v677_v40 = vld [vmem:[#allocation4 + $0x148] sm:$0xff]  ;;  %v2277_v36 = vpack.c.bf16 %v713_v20, %v709_v32 }
 0x184   :  { %2242 = vmatprep.subr.bf16.mxu0 %v2241_v13  ;;  %2340 = vmatprep.subr.bf16.mxu1 %v2339_v42  ;;  %v679_v13 = vld [vmem:[#allocation4 + $0x158] sm:$0xff]  ;;  %v2357_v44 = vpack.c.bf16 %v674_v39, %v670_v37  ;;  %v2261_v47 = vpack.c.bf16 %v681_v41, %v677_v40  ;;  %v708_v37 = vld [vmem:[#allocation4 + $0x240] sm:$0xff]  ;;  %v710_v39 = vld [vmem:[#allocation4 + $0x250] sm:$0xff] }
 0x185   :  { %v683_v42 = vld [vmem:[#allocation4 + $0x178] sm:$0xff]  ;;  %v714_v41 = vld [vmem:[#allocation4 + $0x270] sm:$0xff] }
 0x186   :  { %1936 = vmatmul.mubr.msk.f32.vlgmr.msra.gmra.mrb[8].mxu0 %vm516_vm7, %v1035_v55  ;;  %1939 = vmatmul.mubr.msk.f32.vlgmr.msra.gmra.mrb[8].mxu1 %vm516_vm7, %v1035_v55  ;;  %v2359_v51 = vpack.c.bf16 %v683_v42, %v679_v13  ;;  %v689_v55 = vld [vmem:[#allocation4 + $0x1a8] sm:$0xff]  ;;  %v2377_v48 = vpack.c.bf16 %v714_v41, %v710_v39  ;;  %v734_v18 = vld [vmem:[#allocation4 + $0x310] sm:$0xff]  ;;  %v748_v39 = vld [vmem:[#allocation4 + $0x380] sm:$0xff] }
 0x187   :  { %2244 = vmatpush1.bf16.msra.mxu0 %v2243_v54  ;;  %1434 = vmatprep.mubr.f32.mxu0 %v1353_v60  ;;  %v685_v54 = vld [vmem:[#allocation4 + $0x188] sm:$0xff]  ;;  %v738_v21 = vld [vmem:[#allocation4 + $0x330] sm:$0xff] }
 0x188   :  { %2342 = vmatpush1.bf16.msra.mxu1 %v2341_v56  ;;  %1576 = vmatprep.mubr.f32.mxu1 %v1353_v60  ;;  %v687_v56 = vld [vmem:[#allocation4 + $0x198] sm:$0xff]  ;;  %v2265_v60 = vpack.c.bf16 %v689_v55, %v685_v54  ;;  %v717_v13 = vld [vmem:[#allocation4 + $0x288] sm:$0xff]  ;;  %v722_v55 = vld [vmem:[#allocation4 + $0x2b0] sm:$0xff] }
 0x189   :  { %2246 = vmatprep.subr.bf16.mxu0 %v2245_v61  ;;  %2344 = vmatprep.subr.bf16.mxu1 %v2343_v62  ;;  %v684_v61 = vld [vmem:[#allocation4 + $0x180] sm:$0xff]  ;;  %v2363_v1 = vpack.c.bf16 %v691_v57, %v687_v56  ;;  %v721_v42 = vld [vmem:[#allocation4 + $0x2a8] sm:$0xff]  ;;  %v742_v31 = vld [vmem:[#allocation4 + $0x350] sm:$0xff] }
 0x18a   :  { %v688_v62 = vld [vmem:[#allocation4 + $0x1a0] sm:$0xff]  ;;  %v2281_v49 = vpack.c.bf16 %v721_v42, %v717_v13  ;;  %v725_v56 = vld [vmem:[#allocation4 + $0x2c8] sm:$0xff]  ;;  %v746_v20 = vld [vmem:[#allocation4 + $0x370] sm:$0xff] }
 0x18b   :  { %2248 = vmatpush1.bf16.msra.mxu0 %v2247_v6  ;;  %v695_v6 = vld [vmem:[#allocation4 + $0x1d8] sm:$0xff]  ;;  %v729_v57 = vld [vmem:[#allocation4 + $0x2e8] sm:$0xff]  ;;  %v750_v41 = vld [vmem:[#allocation4 + $0x390] sm:$0xff] }
 0x18c   :  { %2346 = vmatpush1.bf16.msra.mxu1 %v2345_v9  ;;  %2250 = vmatprep.subr.bf16.mxu0 %v2249_v10  ;;  %v699_v9 = vld [vmem:[#allocation4 + $0x1f8] sm:$0xff]  ;;  %v2267_v10 = vpack.c.bf16 %v688_v62, %v684_v61  ;;  %v2381_v61 = vpack.c.bf16 %v722_v55, %v718_v3  ;;  %v2285_v62 = vpack.c.bf16 %v729_v57, %v725_v56  ;;  %v754_v42 = vld [vmem:[#allocation4 + $0x3b0] sm:$0xff]  ;;  %v756_v3 = vld [vmem:[#allocation4 + $0x3c0] sm:$0xff] }
 0x18d   :  { %2348 = vmatprep.subr.bf16.mxu1 %v2347_v15  ;;  %v696_v15 = vld [vmem:[#allocation4 + $0x1e0] sm:$0xff]  ;;  %v2367_v17 = vpack.c.bf16 %v699_v9, %v695_v6  ;;  %v733_v6 = vld [vmem:[#allocation4 + $0x308] sm:$0xff]  ;;  %v758_v55 = vld [vmem:[#allocation4 + $0x3d0] sm:$0xff] }
 0x18e   :  { %v737_v9 = vld [vmem:[#allocation4 + $0x328] sm:$0xff]  ;;  %v762_v57 = vld [vmem:[#allocation4 + $0x3f0] sm:$0xff] }
 0x18f   :  { %2252 = vmatpush1.bf16.msra.mxu0 %v2251_v22  ;;  %v703_v22 = vld [vmem:[#allocation4 + $0x218] sm:$0xff] }
 0x190   :  { %2350 = vmatpush1.bf16.msra.mxu1 %v2349_v23  ;;  %2254 = vmatprep.subr.bf16.mxu0 %v2253_v24  ;;  %v707_v23 = vld [vmem:[#allocation4 + $0x238] sm:$0xff]  ;;  %v2271_v24 = vpack.c.bf16 %v696_v15, %v692_v12  ;;  %v2385_v12 = vpack.c.bf16 %v730_v5, %v726_v2  ;;  %v2289_v15 = vpack.c.bf16 %v737_v9, %v733_v6  ;;  %v764_v2 = vld [vmem:[#allocation4 + $0x400] sm:$0xff]  ;;  %v766_v5 = vld [vmem:[#allocation4 + $0x410] sm:$0xff] }
 0x191   :  { %2352 = vmatprep.subr.bf16.mxu1 %v2351_v27  ;;  %v704_v27 = vld [vmem:[#allocation4 + $0x220] sm:$0xff]  ;;  %v2371_v29 = vpack.c.bf16 %v707_v23, %v703_v22  ;;  %v741_v22 = vld [vmem:[#allocation4 + $0x348] sm:$0xff]  ;;  %v770_v9 = vld [vmem:[#allocation4 + $0x430] sm:$0xff] }
 0x192   :  { %v745_v23 = vld [vmem:[#allocation4 + $0x368] sm:$0xff] }
 0x193   :  { %2256 = vmatpush1.bf16.msra.mxu0 %v2255_v8  ;;  %v711_v8 = vld [vmem:[#allocation4 + $0x258] sm:$0xff] }
 0x194   :  { %2354 = vmatpush1.bf16.msra.mxu1 %v2353_v33  ;;  %2258 = vmatprep.subr.bf16.mxu0 %v2257_v34  ;;  %v715_v33 = vld [vmem:[#allocation4 + $0x278] sm:$0xff]  ;;  %v2275_v34 = vpack.c.bf16 %v704_v27, %v700_v26  ;;  %v2389_v26 = vpack.c.bf16 %v738_v21, %v734_v18  ;;  %v2293_v27 = vpack.c.bf16 %v745_v23, %v741_v22  ;;  %v772_v18 = vld [vmem:[#allocation4 + $0x440] sm:$0xff]  ;;  %v774_v21 = vld [vmem:[#allocation4 + $0x450] sm:$0xff] }
 0x195   :  { %2356 = vmatprep.subr.bf16.mxu1 %v2355_v38  ;;  %v712_v38 = vld [vmem:[#allocation4 + $0x260] sm:$0xff]  ;;  %v2375_v40 = vpack.c.bf16 %v715_v33, %v711_v8  ;;  %v749_v8 = vld [vmem:[#allocation4 + $0x388] sm:$0xff]  ;;  %v778_v23 = vld [vmem:[#allocation4 + $0x470] sm:$0xff] }
 0x196   :  { %v753_v33 = vld [vmem:[#allocation4 + $0x3a8] sm:$0xff] }
 0x197   :  { %2260 = vmatpush1.bf16.msra.mxu0 %v2259_v43  ;;  %v719_v43 = vld [vmem:[#allocation4 + $0x298] sm:$0xff] }
 0x198   :  { %2358 = vmatpush1.bf16.msra.mxu1 %v2357_v44  ;;  %2262 = vmatprep.subr.bf16.mxu0 %v2261_v47  ;;  %v723_v44 = vld [vmem:[#allocation4 + $0x2b8] sm:$0xff]  ;;  %v2279_v47 = vpack.c.bf16 %v712_v38, %v708_v37  ;;  %v2393_v37 = vpack.c.bf16 %v746_v20, %v742_v31  ;;  %v2297_v38 = vpack.c.bf16 %v753_v33, %v749_v8  ;;  %v780_v31 = vld [vmem:[#allocation4 + $0x480] sm:$0xff]  ;;  %v782_v20 = vld [vmem:[#allocation4 + $0x490] sm:$0xff] }
 0x199   :  { %2360 = vmatprep.subr.bf16.mxu1 %v2359_v51  ;;  %v720_v51 = vld [vmem:[#allocation4 + $0x2a0] sm:$0xff]  ;;  %v2379_v54 = vpack.c.bf16 %v723_v44, %v719_v43  ;;  %v757_v43 = vld [vmem:[#allocation4 + $0x3c8] sm:$0xff]  ;;  %v786_v33 = vld [vmem:[#allocation4 + $0x4b0] sm:$0xff] }
 0x19a   :  { %v761_v44 = vld [vmem:[#allocation4 + $0x3e8] sm:$0xff] }
 0x19b   :  { %2264 = vmatpush1.bf16.msra.mxu0 %v2263_v58  ;;  %v727_v58 = vld [vmem:[#allocation4 + $0x2d8] sm:$0xff] }
 0x19c   :  { %2362 = vmatpush1.bf16.msra.mxu1 %v2361_v59  ;;  %2266 = vmatprep.subr.bf16.mxu0 %v2265_v60  ;;  %v731_v59 = vld [vmem:[#allocation4 + $0x2f8] sm:$0xff]  ;;  %v2283_v60 = vpack.c.bf16 %v720_v51, %v716_v50  ;;  %v2397_v50 = vpack.c.bf16 %v754_v42, %v750_v41  ;;  %v2301_v51 = vpack.c.bf16 %v761_v44, %v757_v43  ;;  %v792_v41 = vld [vmem:[#allocation4 + $0x4e0] sm:$0xff]  ;;  %v794_v43 = vld [vmem:[#allocation4 + $0x4f0] sm:$0xff] }
 0x19d   :  { %2364 = vmatprep.subr.bf16.mxu1 %v2363_v1  ;;  %v728_v1 = vld [vmem:[#allocation4 + $0x2e0] sm:$0xff]  ;;  %v2383_v4 = vpack.c.bf16 %v731_v59, %v727_v58  ;;  %v765_v58 = vld [vmem:[#allocation4 + $0x408] sm:$0xff] }
 0x19e   :  { %v769_v59 = vld [vmem:[#allocation4 + $0x428] sm:$0xff] }
 0x19f   :  { %2268 = vmatpush1.bf16.msra.mxu0 %v2267_v10  ;;  %v735_v10 = vld [vmem:[#allocation4 + $0x318] sm:$0xff]  ;;  %v797_v44 = vld [vmem:[#allocation4 + $0x508] sm:$0xff] }
 0x1a0   :  { %2366 = vmatpush1.bf16.msra.mxu1 %v2365_v45  ;;  %2270 = vmatprep.subr.bf16.mxu0 %v2269_v11  ;;  %v739_v45 = vld [vmem:[#allocation4 + $0x338] sm:$0xff]  ;;  %v2287_v11 = vpack.c.bf16 %v728_v1, %v724_v63  ;;  %v2401_v63 = vpack.c.bf16 %v762_v57, %v758_v55  ;;  %v2305_v1 = vpack.c.bf16 %v769_v59, %v765_v58  ;;  %v798_v55 = vld [vmem:[#allocation4 + $0x510] sm:$0xff]  ;;  %v805_v58 = vld [vmem:[#allocation4 + $0x548] sm:$0xff] }
 0x1a1   :  { %2368 = vmatprep.subr.bf16.mxu1 %v2367_v17  ;;  %v736_v17 = vld [vmem:[#allocation4 + $0x320] sm:$0xff]  ;;  %v2387_v19 = vpack.c.bf16 %v739_v45, %v735_v10  ;;  %v773_v10 = vld [vmem:[#allocation4 + $0x448] sm:$0xff]  ;;  %v802_v57 = vld [vmem:[#allocation4 + $0x530] sm:$0xff] }
 0x1a2   :  { %v777_v45 = vld [vmem:[#allocation4 + $0x468] sm:$0xff] }
 0x1a3   :  { %2272 = vmatpush1.bf16.msra.mxu0 %v2271_v24  ;;  %v743_v24 = vld [vmem:[#allocation4 + $0x358] sm:$0xff]  ;;  %v809_v59 = vld [vmem:[#allocation4 + $0x568] sm:$0xff] }
 0x1a4   :  { %2370 = vmatpush1.bf16.msra.mxu1 %v2369_v25  ;;  %2274 = vmatprep.subr.bf16.mxu0 %v2273_v53  ;;  %v747_v25 = vld [vmem:[#allocation4 + $0x378] sm:$0xff]  ;;  %v2291_v53 = vpack.c.bf16 %v736_v17, %v732_v16  ;;  %v2405_v16 = vpack.c.bf16 %v770_v9, %v766_v5  ;;  %v2309_v17 = vpack.c.bf16 %v777_v45, %v773_v10  ;;  %v806_v5 = vld [vmem:[#allocation4 + $0x550] sm:$0xff]  ;;  %v813_v10 = vld [vmem:[#allocation4 + $0x588] sm:$0xff] }
 0x1a5   :  { %2372 = vmatprep.subr.bf16.mxu1 %v2371_v29  ;;  %v744_v29 = vld [vmem:[#allocation4 + $0x360] sm:$0xff]  ;;  %v2391_v32 = vpack.c.bf16 %v747_v25, %v743_v24  ;;  %v781_v24 = vld [vmem:[#allocation4 + $0x488] sm:$0xff]  ;;  %v810_v9 = vld [vmem:[#allocation4 + $0x570] sm:$0xff] }
 0x1a6   :  { %v785_v25 = vld [vmem:[#allocation4 + $0x4a8] sm:$0xff] }
 0x1a7   :  { %2276 = vmatpush1.bf16.msra.mxu0 %v2275_v34  ;;  %v751_v34 = vld [vmem:[#allocation4 + $0x398] sm:$0xff]  ;;  %v817_v45 = vld [vmem:[#allocation4 + $0x5a8] sm:$0xff] }
 0x1a8   :  { %2374 = vmatpush1.bf16.msra.mxu1 %v2373_v35  ;;  %2278 = vmatprep.subr.bf16.mxu0 %v2277_v36  ;;  %v755_v35 = vld [vmem:[#allocation4 + $0x3b8] sm:$0xff]  ;;  %v2295_v36 = vpack.c.bf16 %v744_v29, %v740_v28  ;;  %v2409_v28 = vpack.c.bf16 %v778_v23, %v774_v21  ;;  %v2313_v29 = vpack.c.bf16 %v785_v25, %v781_v24  ;;  %v814_v21 = vld [vmem:[#allocation4 + $0x590] sm:$0xff]  ;;  %v821_v24 = vld [vmem:[#allocation4 + $0x5c8] sm:$0xff] }
 0x1a9   :  { %2376 = vmatprep.subr.bf16.mxu1 %v2375_v40  ;;  %v752_v40 = vld [vmem:[#allocation4 + $0x3a0] sm:$0xff]  ;;  %v2395_v13 = vpack.c.bf16 %v755_v35, %v751_v34  ;;  %v789_v34 = vld [vmem:[#allocation4 + $0x4c8] sm:$0xff]  ;;  %v818_v23 = vld [vmem:[#allocation4 + $0x5b0] sm:$0xff] }
 0x1aa   :  { %v793_v35 = vld [vmem:[#allocation4 + $0x4e8] sm:$0xff] }
 0x1ab   :  { %2280 = vmatpush1.bf16.msra.mxu0 %v2279_v47  ;;  %v759_v47 = vld [vmem:[#allocation4 + $0x3d8] sm:$0xff]  ;;  %v825_v25 = vld [vmem:[#allocation4 + $0x5e8] sm:$0x3] }
 0x1ac   :  { %2378 = vmatpush1.bf16.msra.mxu1 %v2377_v48  ;;  %2282 = vmatprep.subr.bf16.mxu0 %v2281_v49  ;;  %v763_v48 = vld [vmem:[#allocation4 + $0x3f8] sm:$0xff]  ;;  %v2299_v49 = vpack.c.bf16 %v752_v40, %v748_v39  ;;  %v2317_v39 = vpack.c.bf16 %v793_v35, %v789_v34  ;;  %v788_v40 = vld [vmem:[#allocation4 + $0x4c0] sm:$0xff]  ;;  %v1701_v35 = vld [vmem:[#allocation9 + $0x88] sm:$0xff] }
 0x1ad   :  { %2380 = vmatprep.subr.bf16.mxu1 %v2379_v54  ;;  %v760_v54 = vld [vmem:[#allocation4 + $0x3e0] sm:$0xff]  ;;  %v2399_v56 = vpack.c.bf16 %v763_v48, %v759_v47  ;;  %v801_v47 = vld [vmem:[#allocation4 + $0x528] sm:$0xff]  ;;  %v799_v48 = vld [vmem:[#allocation4 + $0x518] sm:$0xff] }
 0x1ae   :  { %v1700_v34 = vld [vmem:[#allocation9 + $0x80] sm:$0xff] }
 0x1af   :  { %2284 = vmatpush1.bf16.msra.mxu0 %v2283_v60  ;;  %v767_v60 = vld [vmem:[#allocation4 + $0x418] sm:$0xff] }
 0x1b0   :  { %2382 = vmatpush1.bf16.msra.mxu1 %v2381_v61  ;;  %2286 = vmatprep.subr.bf16.mxu0 %v2285_v62  ;;  %v771_v61 = vld [vmem:[#allocation4 + $0x438] sm:$0xff]  ;;  %v2303_v62 = vpack.c.bf16 %v760_v54, %v756_v3  ;;  %v796_v3 = vld [vmem:[#allocation4 + $0x500] sm:$0xff] }
 0x1b1   :  { %2384 = vmatprep.subr.bf16.mxu1 %v2383_v4  ;;  %v768_v4 = vld [vmem:[#allocation4 + $0x420] sm:$0xff]  ;;  %v2403_v6 = vpack.c.bf16 %v771_v61, %v767_v60  ;;  %v807_v60 = vld [vmem:[#allocation4 + $0x558] sm:$0xff] }
 0x1b2   :  { %v800_v54 = vld [vmem:[#allocation4 + $0x520] sm:$0xff]  ;;  %v811_v61 = vld [vmem:[#allocation4 + $0x578] sm:$0xff] }
 0x1b3   :  { %2288 = vmatpush1.bf16.msra.mxu0 %v2287_v11  ;;  %v775_v11 = vld [vmem:[#allocation4 + $0x458] sm:$0xff] }
 0x1b4   :  { %2386 = vmatpush1.bf16.msra.mxu1 %v2385_v12  ;;  %2290 = vmatprep.subr.bf16.mxu0 %v2289_v15  ;;  %v779_v12 = vld [vmem:[#allocation4 + $0x478] sm:$0xff]  ;;  %v2307_v15 = vpack.c.bf16 %v768_v4, %v764_v2  ;;  %v804_v2 = vld [vmem:[#allocation4 + $0x540] sm:$0xff] }
 0x1b5   :  { %2388 = vmatprep.subr.bf16.mxu1 %v2387_v19  ;;  %v776_v19 = vld [vmem:[#allocation4 + $0x460] sm:$0xff]  ;;  %v2407_v22 = vpack.c.bf16 %v779_v12, %v775_v11  ;;  %v815_v11 = vld [vmem:[#allocation4 + $0x598] sm:$0xff] }
 0x1b6   :  { %v808_v4 = vld [vmem:[#allocation4 + $0x560] sm:$0xff]  ;;  %v819_v12 = vld [vmem:[#allocation4 + $0x5b8] sm:$0xff] }
 0x1b7   :  { %2292 = vmatpush1.bf16.msra.mxu0 %v2291_v53  ;;  %v783_v53 = vld [vmem:[#allocation4 + $0x498] sm:$0xff] }
 0x1b8   :  { %2390 = vmatpush1.bf16.msra.mxu1 %v2389_v26  ;;  %2294 = vmatprep.subr.bf16.mxu0 %v2293_v27  ;;  %v787_v26 = vld [vmem:[#allocation4 + $0x4b8] sm:$0xff]  ;;  %v2311_v27 = vpack.c.bf16 %v776_v19, %v772_v18  ;;  %v812_v18 = vld [vmem:[#allocation4 + $0x580] sm:$0xff] }
 0x1b9   :  { %2392 = vmatprep.subr.bf16.mxu1 %v2391_v32  ;;  %v784_v32 = vld [vmem:[#allocation4 + $0x4a0] sm:$0xff]  ;;  %v2411_v8 = vpack.c.bf16 %v787_v26, %v783_v53  ;;  %v823_v53 = vld [vmem:[#allocation4 + $0x5d8] sm:$0xff] }
 0x1ba   :  { %v816_v19 = vld [vmem:[#allocation4 + $0x5a0] sm:$0xff]  ;;  %v827_v26 = vld [vmem:[#allocation4 + $0x5f8] sm:$0x3] }
 0x1bb   :  { %2296 = vmatpush1.bf16.msra.mxu0 %v2295_v36  ;;  %v791_v36 = vld [vmem:[#allocation4 + $0x4d8] sm:$0xff] }
 0x1bc   :  { %2394 = vmatpush1.bf16.msra.mxu1 %v2393_v37  ;;  %2298 = vmatprep.subr.bf16.mxu0 %v2297_v38  ;;  %v795_v37 = vld [vmem:[#allocation4 + $0x4f8] sm:$0xff]  ;;  %v2413_v38 = vpack.c.bf16 %v786_v33, %v782_v20  ;;  %v822_v20 = vld [vmem:[#allocation4 + $0x5d0] sm:$0xff] }
 0x1bd   :  { %2396 = vmatprep.subr.bf16.mxu1 %v2395_v13  ;;  %v790_v13 = vld [vmem:[#allocation4 + $0x4d0] sm:$0xff]  ;;  %v2415_v42 = vpack.c.bf16 %v795_v37, %v791_v36  ;;  %v1732_v36 = vld [vmem:[#allocation9 + $0x180] sm:$0xff]  ;;  %v1733_v37 = vld [vmem:[#allocation9 + $0x188] sm:$0xff] }
 0x1be   :  { %v826_v33 = vld [vmem:[#allocation4 + $0x5f0] sm:$0x3] }
 0x1bf   :  { %2300 = vmatpush1.bf16.msra.mxu0 %v2299_v49  ;;  %v803_v49 = vld [vmem:[#allocation4 + $0x538] sm:$0xff] }
 0x1c0   :  { %2398 = vmatpush1.bf16.msra.mxu1 %v2397_v50  ;;  %2302 = vmatprep.subr.bf16.mxu0 %v2301_v51  ;;  %v2319_v50 = vpack.c.bf16 %v792_v41, %v788_v40  ;;  %v2321_v51 = vpack.c.bf16 %v801_v47, %v797_v44  ;;  %v2437_v40 = vpack.c.bf16 %v1701_v35, %v1700_v34  ;;  %v1684_v41 = vld [vmem:[#allocation9] sm:$0xff]  ;;  %v1717_v44 = vld [vmem:[#allocation9 + $0x108] sm:$0xff]  ;;  %v1702_v47 = vld [vmem:[#allocation9 + $0x90] sm:$0xff] }
 0x1c1   :  { %2400 = vmatprep.subr.bf16.mxu1 %v2399_v56  ;;  %v2419_v56 = vpack.c.bf16 %v803_v49, %v799_v48  ;;  %v1703_v48 = vld [vmem:[#allocation9 + $0x98] sm:$0xff]  ;;  %v1734_v49 = vld [vmem:[#allocation9 + $0x190] sm:$0xff] }
 0x1c2   :  { %v1711_v34 = vld [vmem:[#allocation9 + $0xd8] sm:$0xff]  ;;  %v1742_v35 = vld [vmem:[#allocation9 + $0x1d0] sm:$0xff] }
 0x1c3   :  { %2304 = vmatpush1.bf16.msra.mxu0 %v2303_v62  ;;  %v2323_v62 = vpack.c.bf16 %v800_v54, %v796_v3  ;;  %v2441_v3 = vpack.c.bf16 %v1703_v48, %v1702_v47  ;;  %v1686_v54 = vld [vmem:[#allocation9 + $0x10] sm:$0xff]  ;;  %v1744_v47 = vld [vmem:[#allocation9 + $0x1e0] sm:$0xff]  ;;  %v1745_v48 = vld [vmem:[#allocation9 + $0x1e8] sm:$0xff] }
 0x1c4   :  { %2402 = vmatpush1.bf16.msra.mxu1 %v2401_v63  ;;  %2306 = vmatprep.subr.bf16.mxu0 %v2305_v1  ;;  %v2421_v63 = vpack.c.bf16 %v802_v57, %v798_v55  ;;  %v2325_v1 = vpack.c.bf16 %v809_v59, %v805_v58  ;;  %v1687_v55 = vld [vmem:[#allocation9 + $0x18] sm:$0xff]  ;;  %v1704_v59 = vld [vmem:[#allocation9 + $0xa0] sm:$0xff] }
 0x1c5   :  { %2404 = vmatprep.subr.bf16.mxu1 %v2403_v6  ;;  %v2423_v6 = vpack.c.bf16 %v811_v61, %v807_v60  ;;  %v1719_v58 = vld [vmem:[#allocation9 + $0x118] sm:$0xff]  ;;  %v1705_v60 = vld [vmem:[#allocation9 + $0xa8] sm:$0xff]  ;;  %v1736_v61 = vld [vmem:[#allocation9 + $0x1a0] sm:$0xff]  ;;  %v2443_v30 = vpack.c.bf16 %v1687_v55, %v1686_v54 }
 0x1c6   :  { %1435 = vmatmul.mubr.f32.vlgmr.msra.gmra.mrb[8].mxu0 %v2956_v46  ;;  %v1728_v54 = vld [vmem:[#allocation9 + $0x160] sm:$0xff] }
 0x1c7   :  { %1577 = vmatmul.mubr.f32.vlgmr.msra.gmra.mrb[8].mxu1 %v2956_v46  ;;  %2308 = vmatpush1.bf16.msra.mxu0 %v2307_v15  ;;  %v2315_v46 = vpack.c.bf16 %v784_v32, %v780_v31  ;;  %v2327_v15 = vpack.c.bf16 %v808_v4, %v804_v2  ;;  %v820_v31 = vld [vmem:[#allocation4 + $0x5c0] sm:$0xff]  ;;  %v1689_v2 = vld [vmem:[#allocation9 + $0x28] sm:$0xff] }
 0x1c8   :  { %2406 = vmatpush1.bf16.msra.mxu1 %v2405_v16  ;;  %2310 = vmatprep.subr.bf16.mxu0 %v2309_v17  ;;  %v2425_v16 = vpack.c.bf16 %v810_v9, %v806_v5  ;;  %v2329_v17 = vpack.c.bf16 %v817_v45, %v813_v10  ;;  %v824_v32 = vld [vmem:[#allocation4 + $0x5e0] sm:$0x3]  ;;  %v1706_v9 = vld [vmem:[#allocation9 + $0xb0] sm:$0xff]  ;;  %v1707_v10 = vld [vmem:[#allocation9 + $0xb8] sm:$0xff] }
 0x1c9   :  { %2408 = vmatprep.subr.bf16.mxu1 %v2407_v22  ;;  %1505 = vmatprep.mubr.f32.mxu0 %v2688_v0  ;;  %v2427_v22 = vpack.c.bf16 %v819_v12, %v815_v11  ;;  %v1720_v4 = vld [vmem:[#allocation9 + $0x120] sm:$0xff]  ;;  %v1738_v45 = vld [vmem:[#allocation9 + $0x1b0] sm:$0xff]  ;;  %v1739_v11 = vld [vmem:[#allocation9 + $0x1b8] sm:$0xff] }
 0x1ca   :  { %1647 = vmatprep.mubr.f32.mxu1 %v2688_v0  ;;  %v2417_v0 = vpack.c.bf16 %v794_v43, %v790_v13  ;;  %v1685_v13 = vld [vmem:[#allocation9 + $0x8] sm:$0xff]  ;;  %v2469_v43 = vpack.c.bf16 %v1733_v37, %v1732_v36  ;;  %v1743_v36 = vld [vmem:[#allocation9 + $0x1d8] sm:$0xff] }
 0x1cb   :  { %2312 = vmatpush1.bf16.msra.mxu0 %v2311_v27  ;;  %v2331_v27 = vpack.c.bf16 %v816_v19, %v812_v18  ;;  %v1691_v18 = vld [vmem:[#allocation9 + $0x38] sm:$0xff]  ;;  %v1722_v19 = vld [vmem:[#allocation9 + $0x130] sm:$0xff] }
 0x1cc   :  { %2410 = vmatpush1.bf16.msra.mxu1 %v2409_v28  ;;  %2314 = vmatprep.subr.bf16.mxu0 %v2313_v29  ;;  %v2429_v28 = vpack.c.bf16 %v818_v23, %v814_v21  ;;  %v2333_v29 = vpack.c.bf16 %v825_v25, %v821_v24  ;;  %v2481_v21 = vpack.c.bf16 %v1739_v11, %v1738_v45  ;;  %v1708_v23 = vld [vmem:[#allocation9 + $0xc0] sm:$0xff]  ;;  %v1709_v24 = vld [vmem:[#allocation9 + $0xc8] sm:$0xff]  ;;  %v1662_v45 = vsub.s32 1, %v2792_v7 }
 0x1cd   :  { %2412 = vmatprep.subr.bf16.mxu1 %v2411_v8  ;;  %v2431_v8 = vpack.c.bf16 %v827_v26, %v823_v53  ;;  %v1740_v25 = vld [vmem:[#allocation9 + $0x1c0] sm:$0xff]  ;;  %v1741_v53 = vld [vmem:[#allocation9 + $0x1c8] sm:$0xff]  ;;  %v1670_v11 = vsub.s32 3, %v2792_v7 }
 0x1cf   :  { %2316 = vmatpush1.bf16.msra.mxu0 %v2315_v46  ;;  %v2336_v46 = vpack.c.bf16 %v824_v32, %v820_v31  ;;  %v1693_v31 = vld [vmem:[#allocation9 + $0x48] sm:$0xff]  ;;  %v1724_v32 = vld [vmem:[#allocation9 + $0x140] sm:$0xff] }
 0x1d0   :  { %2414 = vmatpush1.bf16.msra.mxu1 %v2413_v38  ;;  %2318 = vmatprep.subr.bf16.mxu0 %v2317_v39  ;;  %v2434_v38 = vpack.c.bf16 %v826_v33, %v822_v20  ;;  %v1338_v39 = vcombine.high %v2933_v52, %v2933_v52  ;;  %v2485_v20 = vpack.c.bf16 %v1741_v53, %v1740_v25  ;;  %v1710_v33 = vld [vmem:[#allocation9 + $0xd0] sm:$0xff] }
 0x1d1   :  { %2416 = vmatprep.subr.bf16.mxu1 %v2415_v42  ;;  %v1716_v42 = vld [vmem:[#allocation9 + $0x100] sm:$0xff] }
 0x1d2   :  { %v1352_v52 = vrot.slane %v1338_v39, %v2809_v14  ;;  %v1694_v39 = vld [vmem:[#allocation9 + $0x50] sm:$0xff] }
 0x1d3   :  { %2320 = vmatpush1.bf16.msra.mxu0 %v2319_v50  ;;  %v1735_v50 = vld [vmem:[#allocation9 + $0x198] sm:$0xff] }
 0x1d4   :  { %2418 = vmatpush1.bf16.msra.mxu1 %v2417_v0  ;;  %2322 = vmatprep.subr.bf16.mxu0 %v2321_v51  ;;  %v2439_v0 = vpack.c.bf16 %v1685_v13, %v1684_v41  ;;  %v2471_v51 = vpack.c.bf16 %v1717_v44, %v1716_v42  ;;  %v2473_v57 = vpack.c.bf16 %v1735_v50, %v1734_v49  ;;  %v1726_v41 = vld [vmem:[#allocation9 + $0x150] sm:$0xff]  ;;  %v1727_v42 = vld [vmem:[#allocation9 + $0x158] sm:$0xff]  ;;  %v1713_v44 = vld [vmem:[#allocation9 + $0xe8] sm:$0xff] }
 0x1d5   :  { %2420 = vmatprep.subr.bf16.mxu1 %v2419_v56  ;;  %v1718_v56 = vld [vmem:[#allocation9 + $0x110] sm:$0xff]  ;;  %v2489_v13 = vpack.c.bf16 %v1743_v36, %v1742_v35  ;;  %v2491_v50 = vpack.c.bf16 %v1727_v42, %v1726_v41 }
 0x1d6   :  { %v2475_v14 = vpack.c.bf16 %v1719_v58, %v1718_v56  ;;  %v1729_v56 = vld [vmem:[#allocation9 + $0x168] sm:$0xff]  ;;  %v1714_v58 = vld [vmem:[#allocation9 + $0xf0] sm:$0xff] }
 0x1d7   :  { %2324 = vmatpush1.bf16.msra.mxu0 %v2323_v62  ;;  %v1737_v62 = vld [vmem:[#allocation9 + $0x1a8] sm:$0xff] }
 0x1d8   :  { %2422 = vmatpush1.bf16.msra.mxu1 %v2421_v63  ;;  %2326 = vmatprep.subr.bf16.mxu0 %v2325_v1  ;;  %v2445_v63 = vpack.c.bf16 %v1705_v60, %v1704_v59  ;;  %v1688_v1 = vld [vmem:[#allocation9 + $0x20] sm:$0xff]  ;;  %v2477_v5 = vpack.c.bf16 %v1737_v62, %v1736_v61  ;;  %v1715_v59 = vld [vmem:[#allocation9 + $0xf8] sm:$0xff]  ;;  %v1746_v60 = vld [vmem:[#allocation9 + $0x1f0] sm:$0xff] }
 0x1d9   :  { %2424 = vmatprep.subr.bf16.mxu1 %v2423_v6  ;;  %v1721_v6 = vld [vmem:[#allocation9 + $0x128] sm:$0xff]  ;;  %v2447_v12 = vpack.c.bf16 %v1689_v2, %v1688_v1  ;;  %v2465_v61 = vpack.c.bf16 %v1715_v59, %v1714_v58  ;;  %v1747_v62 = vld [vmem:[#allocation9 + $0x1f8] sm:$0xff]  ;;  %v1730_v2 = vld [vmem:[#allocation9 + $0x170] sm:$0xff] }
 0x1db   :  { %2328 = vmatpush1.bf16.msra.mxu0 %v2327_v15  ;;  %v2479_v15 = vpack.c.bf16 %v1721_v6, %v1720_v4  ;;  %v1731_v4 = vld [vmem:[#allocation9 + $0x178] sm:$0xff]  ;;  %v1658_v6 = vsub.s32 0, %v2792_v7 }
 0x1dc   :  { %2426 = vmatpush1.bf16.msra.mxu1 %v2425_v16  ;;  %2330 = vmatprep.subr.bf16.mxu0 %v2329_v17  ;;  %v2449_v16 = vpack.c.bf16 %v1707_v10, %v1706_v9  ;;  %v1690_v17 = vld [vmem:[#allocation9 + $0x30] sm:$0xff]  ;;  %v1666_v10 = vsub.s32 2, %v2792_v7 }
 0x1dd   :  { %2428 = vmatprep.subr.bf16.mxu1 %v2427_v22  ;;  %v1723_v22 = vld [vmem:[#allocation9 + $0x138] sm:$0xff]  ;;  %v2451_v26 = vpack.c.bf16 %v1691_v18, %v1690_v17  ;;  %v1654_v9 = vld [vmem:[%s3010_s4] sm:$0xf] }
 0x1de   :  { %v1671_v17 = vrot.slane %v1654_v9, %v1670_v11 }
 0x1df   :  { %2332 = vmatpush1.bf16.msra.mxu0 %v2331_v27  ;;  %v2483_v27 = vpack.c.bf16 %v1723_v22, %v1722_v19 }
 0x1e0   :  { %2430 = vmatpush1.bf16.msra.mxu1 %v2429_v28  ;;  %2335 = vmatprep.subr.msk.bf16.mxu0 %vm2944_vm3, %v2333_v29  ;;  %v2453_v28 = vpack.c.bf16 %v1709_v24, %v1708_v23  ;;  %v1692_v29 = vld [vmem:[#allocation9 + $0x40] sm:$0xff] }
 0x1e1   :  { %2433 = vmatprep.subr.msk.bf16.mxu1 %vm2944_vm3, %v2431_v8  ;;  %v1725_v8 = vld [vmem:[#allocation9 + $0x148] sm:$0xff]  ;;  %v2455_v37 = vpack.c.bf16 %v1693_v31, %v1692_v29 }
 0x1e3   :  { %2338 = vmatpush1.bf16.msk.msra.mxu0 %vm2944_vm3, %v2336_v46  ;;  %v2487_v46 = vpack.c.bf16 %v1725_v8, %v1724_v32  ;;  %v1946_v32 = vld [vmem:[%s3012_s6] ss:$0 sm:$0xff] }
 0x1e4   :  { %2436 = vmatpush1.bf16.msk.msra.mxu1 %vm2944_vm3, %v2434_v38  ;;  %2438 = vmatprep.subr.bf16.mxu0 %v2437_v40  ;;  %v2457_v38 = vpack.c.bf16 %v1711_v34, %v1710_v33  ;;  %v1695_v40 = vld [vmem:[#allocation9 + $0x58] sm:$0xff] }
 0x1e5   :  { %2470 = vmatprep.subr.bf16.mxu1 %v2469_v43  ;;  %v1712_v43 = vld [vmem:[#allocation9 + $0xe0] sm:$0xff]  ;;  %v2459_v49 = vpack.c.bf16 %v1695_v40, %v1694_v39 }
 0x1e6   :  { %1942 = vmatmul.mubr.msk.f32.vlgmr.msra.gmra.mrb[8].mxu0 %vm516_vm7, %v1352_v52 }
 0x1e7   :  { %1945 = vmatmul.mubr.msk.f32.vlgmr.msra.gmra.mrb[8].mxu1 %vm516_vm7, %v1352_v52  ;;  %2440 = vmatpush3.bf16.msra.mxu0 %v2439_v0  ;;  %v2461_v0 = vpack.c.bf16 %v1713_v44, %v1712_v43  ;;  %v2493_v52 = vpack.c.bf16 %v1745_v48, %v1744_v47 }
 0x1e8   :  { %2472 = vmatpush3.bf16.msra.mxu1 %v2471_v51  ;;  %2442 = vmatprep.subr.bf16.mxu0 %v2441_v3  ;;  %v1696_v51 = vld [vmem:[#allocation9 + $0x60] sm:$0xff]  ;;  %v1697_v3 = vld [vmem:[#allocation9 + $0x68] sm:$0xff] }
 0x1e9   :  { %2474 = vmatprep.subr.bf16.mxu1 %v2473_v57  ;;  %v2463_v55 = vpack.c.bf16 %v1697_v3, %v1696_v51  ;;  %v2495_v57 = vpack.c.bf16 %v1729_v56, %v1728_v54 }
 0x1eb   :  { %2444 = vmatpush3.bf16.msra.mxu0 %v2443_v30  ;;  %v1698_v30 = vld [vmem:[#allocation9 + $0x70] sm:$0xff] }
 0x1ec   :  { %2476 = vmatpush3.bf16.msra.mxu1 %v2475_v14  ;;  %2446 = vmatprep.subr.bf16.mxu0 %v2445_v63  ;;  %v1699_v14 = vld [vmem:[#allocation9 + $0x78] sm:$0xff]  ;;  %v2497_v63 = vpack.c.bf16 %v1747_v62, %v1746_v60 }
 0x1ed   :  { %2478 = vmatprep.subr.bf16.mxu1 %v2477_v5  ;;  %v2467_v1 = vpack.c.bf16 %v1699_v14, %v1698_v30  ;;  %v2499_v5 = vpack.c.bf16 %v1731_v4, %v1730_v2 }
 0x1ef   :  { %2448 = vmatpush3.bf16.msra.mxu0 %v2447_v12  ;;  %v1659_v12 = vrot.slane %v1654_v9, %v1658_v6 }
 0x1f0   :  { %2480 = vmatpush3.bf16.msra.mxu1 %v2479_v15  ;;  %2450 = vmatprep.subr.bf16.mxu0 %v2449_v16  ;;  %v1667_v15 = vrot.slane %v1654_v9, %v1666_v10  ;;  %v1663_v16 = vrot.slane %v1654_v9, %v1662_v45 }
 0x1f1   :  { %2482 = vmatprep.subr.bf16.mxu1 %v2481_v21 }
 0x1f3   :  { %2452 = vmatpush3.bf16.msra.mxu0 %v2451_v26 }
 0x1f4   :  { %2484 = vmatpush3.bf16.msra.mxu1 %v2483_v27  ;;  %2454 = vmatprep.subr.bf16.mxu0 %v2453_v28 }
 0x1f5   :  { %2486 = vmatprep.subr.bf16.mxu1 %v2485_v20 }
 0x1f7   :  { %2456 = vmatpush3.bf16.msra.mxu0 %v2455_v37 }
 0x1f8   :  { %2488 = vmatpush3.bf16.msra.mxu1 %v2487_v46  ;;  %2458 = vmatprep.subr.bf16.mxu0 %v2457_v38 }
 0x1f9   :  { %2490 = vmatprep.subr.bf16.mxu1 %v2489_v13 }
 0x1fb   :  { %2460 = vmatpush3.bf16.msra.mxu0 %v2459_v49 }
 0x1fc   :  { %2492 = vmatpush3.bf16.msra.mxu1 %v2491_v50  ;;  %2462 = vmatprep.subr.bf16.mxu0 %v2461_v0 }
 0x1fd   :  { %2494 = vmatprep.subr.bf16.mxu1 %v2493_v52 }
 0x1ff   :  { %2464 = vmatpush3.bf16.msra.mxu0 %v2463_v55 }
 0x200   :  { %2496 = vmatpush3.bf16.msra.mxu1 %v2495_v57  ;;  %2466 = vmatprep.subr.bf16.mxu0 %v2465_v61 }
 0x201   :  { %2498 = vmatprep.subr.bf16.mxu1 %v2497_v63 }
 0x203   :  { %2468 = vmatpush3.bf16.msra.mxu0 %v2467_v1 }
 0x204   :  { %2500 = vmatpush3.bf16.msra.mxu1 %v2499_v5 }
 0x2b9   :  { %v1507_v18 = vpop.f32.mrb[8].mxu0 }
 0x2ba   :  { %v1676_v19 = vadd.f32 %v1659_v12, %v1507_v18  ;;  %v1649_v21 = vpop.f32.mrb[8].mxu1  ;;  %v1509_v22 = vpop.f32.mrb[9].mxu0 }
 0x2bb   :  { %v1678_v23 = vadd.f32 %v1667_v15, %v1649_v21  ;;  %v1677_v24 = vadd.f32 %v1663_v16, %v1509_v22  ;;  %v1651_v25 = vpop.f32.mrb[9].mxu1 }
 0x2bc   :  { %v1679_v53 = vadd.f32 %v1671_v17, %v1651_v25  ;;  %v1680_v27 = vmax.f32 %v1676_v19, 0.0 }
 0x2bd   :  { %v1681_v26 = vmax.f32 %v1677_v24, 0.0  ;;  %v1682_v29 = vmax.f32 %v1678_v23, 0.0 }
 0x2be   :  { %v1683_v28 = vmax.f32 %v1679_v53, 0.0 }
 0x2bf   :  { %1819 = vmatprep.mubr.f32.mxu0 %v1681_v26 }
 0x2c0   :  { %1889 = vmatprep.mubr.f32.mxu1 %v1683_v28  ;;  %1820 = vmatmul.mubr.f32.vlgmr.msra.gmra.mrb[10].mxu0 %v1680_v27 }
 0x2c1   :  { %1890 = vmatmul.mubr.f32.vlgmr.msra.gmra.mrb[10].mxu1 %v1682_v29 }
 0x393   :  { %v1987_v7 = vpop.f32.mrb[10].mxu0 }
 0x394   :  { %v2022_v31 = vpop.f32.mrb[10].mxu1  ;;  %v1988_v20 = vpop.f32.mrb[11].mxu0 }
 0x395   :  { %v1989_v8 = vadd.f32 %v1988_v20, %v1987_v7  ;;  %v2023_v33 = vpop.f32.mrb[11].mxu1 }
 0x396   :  { %v2024_v34 = vadd.f32 %v2023_v33, %v2022_v31 }
 0x397   :  { %v1822_v35 = vadd.f32 %v1989_v8, %v1946_v32 }
 0x399   :  { %v1892_v36 = vadd.f32 %v2024_v34, %v1822_v35 }
 0x39b   :  { %1895 = vst [vmem:[#allocation10] sm:$0x3] %v1892_v36 }
 0x39c   :  { %2624 = shalt.err (!%p2621_p0)
}
 0x39d   :  { %s2625_s6 = scalar_lea.hbm %s3013_s7, 32 }
 0x39e   :  { %p2626_p1 = scmp.ne.s32.totalorder %s3013_s7, %s2625_s6  ;;  %p2629_p2 = scmp.lt.u32.totalorder %s2625_s6, %s3013_s7 }
 0x3a0   :  { %p2631_p3 = pnand %p2629_p2, %p2626_p1 }
 0x3a2   :  { %2634 = shalt.err (!%p2631_p3)
}
 0x3a3   :  { %1905 = dma.vmem_to_hbm [thread:$0]  %s1903_s12, 32, %s3013_s7, [#allocation6]  }
 0x3a4   :  { %2639 = dma.done.wait [#allocation6], 32  }
 0x3a5   :  { %2640 = vsyncadd [#allocation6], 4294967264 }
 0x3a6   :  { %1909 = vsyncpa [#allocation5], 1 }
 0x3a7   :  { %1910 = vsyncpa [#allocation8], 1 }
 0x3a8   :  { %1911 = vsyncpa [#allocation6], 1 }

</bundles_post_ra>
